<compile_context>
chip_gen: v7x
topology: tpu7x:2x2x1
jax: 0.10.0
libtpu: 0.0.40
codegen_flags: <defaults>
</compile_context>

<pallas_src>
import functools

import jax
import jax.numpy as jnp
from jax.experimental import pallas as pl
from jax.experimental.pallas import tpu as pltpu


# ---------------------------------------------------------------------------
# Fused Pallas kernel
# ---------------------------------------------------------------------------

def _fused_tcn_kernel(x_ref, w_ref, b_ref, o_ref, *, plan, T, bB, Cpad,
                      wl_idx, bl_idx, compute_dtype):
    cd = compute_dtype
    rows = bB * T
    h = x_ref[...].astype(jnp.float32)                       # (bB, T, Cpad)

    # time index, hoisted once (JAX does not CSE broadcast_in_dim)
    t_idx = jax.lax.broadcasted_iota(jnp.int32, (bB, T, Cpad), 1)

    def shift(a, d):
        """Causal shift along time: out[:, t] = a[:, t-d] for t >= d, else 0."""
        if d >= T:                                            # whole tap masked
            return jnp.zeros_like(a)
        if d == 0:
            return a
        rolled = pltpu.roll(a, shift=d, axis=1)               # XLU sublane rotate
        return jnp.where(t_idx >= d, rolled, 0.0)             # VPU mask

    def w(i):                                                 # (Cpad, Cpad)
        return w_ref[i]

    def b(i):                                                 # (1, Cpad) f32
        return b_ref[pl.ds(i, 1), :]

    def mm(lhs, i):                                           # f32 accumulation
        return jnp.dot(lhs.astype(cd), w(i), preferred_element_type=jnp.float32)

    n_blocks = len(plan)
    h_last = None
    for bi, blk in enumerate(plan):                           # statically unrolled
        d = blk["dilation"]
        if bi < n_blocks - 1:
            # ---- full-sequence TemporalBlock ----
            h_flat = h.reshape(rows, Cpad)
            hs_flat = shift(h, d).reshape(rows, Cpad)
            h1 = jax.nn.relu(mm(hs_flat, blk["w1a"]) + mm(h_flat, blk["w1b"])
                             + b(blk["b1"]))
            h1s_flat = shift(h1.reshape(bB, T, Cpad), d).reshape(rows, Cpad)
            h2 = jax.nn.relu(mm(h1s_flat, blk["w2a"]) + mm(h1, blk["w2b"])
                             + b(blk["b2"]))
            if blk["wd"] is not None:
                res = mm(h_flat, blk["wd"]) + b(blk["bd"])
            else:
                res = h_flat
            h = jax.nn.relu(h2 + res).reshape(bB, T, Cpad)
        else:
            # ---- last TemporalBlock: only the causal cone feeding t = T-1 ----
            def h_at(t):
                if t < 0:
                    return jnp.zeros((bB, Cpad), jnp.float32)
                return h[:, t, :]

            a0 = h_at(T - 1)
            a1 = h_at(T - 1 - d)
            a2 = h_at(T - 1 - 2 * d)

            def conv1_at(x_prev, x_cur):
                return jax.nn.relu(mm(x_prev, blk["w1a"]) + mm(x_cur, blk["w1b"])
                                   + b(blk["b1"]))

            h1_last = conv1_at(a1, a0)                        # conv1 @ t = T-1
            if T - 1 - d >= 0:
                h1_prev = conv1_at(a2, a1)                    # conv1 @ t = T-1-d
                tap0 = mm(h1_prev, blk["w2a"])
            else:                                             # causal zero pad
                tap0 = jnp.zeros((bB, Cpad), jnp.float32)
            h2 = jax.nn.relu(tap0 + mm(h1_last, blk["w2b"]) + b(blk["b2"]))
            if blk["wd"] is not None:
                res = mm(a0, blk["wd"]) + b(blk["bd"])
            else:
                res = a0
            h_last = jax.nn.relu(h2 + res)                    # (bB, Cpad)

    # final Linear on the last timestep (== x[:, :, -1] in the NCT layout)
    o_ref[0] = mm(h_last, wl_idx) + b(bl_idx)


# ---------------------------------------------------------------------------
# Tiling policy
# ---------------------------------------------------------------------------

def _plan_grid(B, T, Cpad):
    """Generation-aware batch tiling.

    v5e/v6e have one TensorCore: grid steps run sequentially, so extra steps are
    pure prologue/epilogue overhead -> use a single step whenever the VMEM
    budget allows.  Budget: ~6 live (bB*T, Cpad) f32 activation slabs, so keep
    bB*T*Cpad <= ~1M elements (safe inside v7x's 64 MiB VMEM as well).
    Only on v7x, and only when each half still fills the MXU M dim (>=256 rows),
    split the batch across the two TensorCores with CORE_PARALLEL.
    """
    max_elems = 1 << 20
    divisors = sorted((d for d in range(1, B + 1) if B % d == 0), reverse=True)
    bB = next((d for d in divisors if d * T * Cpad <= max_elems), 1)
    num_tiles = B // bB
    semantics = "arbitrary"
    try:
        kind = jax.devices()[0].device_kind.lower()
    except Exception:
        kind = ""
    if "v7" in kind and num_tiles == 1 and B % 2 == 0 and (B // 2) * T >= 256:
        bB, num_tiles, semantics = B // 2, 2, pltpu.CORE_PARALLEL
    return bB, num_tiles, semantics


# ---------------------------------------------------------------------------
# One-time parameter preparation (torch layout -> packed kernel slabs)
# ---------------------------------------------------------------------------

def prepare_params(params, compute_dtype=jnp.bfloat16):
    """Pack all weights into one (Nw, Cpad, Cpad) slab (compute dtype) and all
    biases into one (Nb, Cpad) f32 slab; record static slab indices in `plan`."""
    dims = []
    for blk in params["blocks"]:
        dims += [blk["w1"].shape[1], blk["w1"].shape[0]]
    dims += [params["wl"].shape[0], params["wl"].shape[1]]
    cmax = max(dims)
    Cpad = max(8, ((cmax + 7) // 8) * 8)

    w_list, b_list, plan = [], [], []

    def pad_w(w2d):
        return jnp.zeros((Cpad, Cpad), jnp.float32).at[
            : w2d.shape[0], : w2d.shape[1]].set(w2d)

    def pad_b(b1d):
        return jnp.zeros((Cpad,), jnp.float32).at[: b1d.shape[0]].set(b1d)

    def add_w(w2d):
        w_list.append(pad_w(w2d)); return len(w_list) - 1

    def add_b(b1d):
        b_list.append(pad_b(b1d)); return len(b_list) - 1

    for blk in params["blocks"]:
        w1, w2 = blk["w1"], blk["w2"]          # torch layout (C_out, C_in, K=2)
        entry = {
            "dilation": int(blk["dilation"]),
            # tap k=0 applies to x[t-d], tap k=1 to x[t]
            "w1a": add_w(w1[:, :, 0].T), "w1b": add_w(w1[:, :, 1].T),
            "b1": add_b(blk["b1"]),
            "w2a": add_w(w2[:, :, 0].T), "w2b": add_w(w2[:, :, 1].T),
            "b2": add_b(blk["b2"]),
            "wd": None, "bd": None,
        }
        if "wd" in blk:
            entry["wd"] = add_w(blk["wd"][:, :, 0].T)
            entry["bd"] = add_b(blk["bd"])
        plan.append(entry)

    wl_idx = add_w(params["wl"].T)             # (C_h, O) padded
    bl_idx = add_b(params["bl"])

    return {
        "plan": plan,
        "w": jnp.stack(w_list).astype(compute_dtype),   # (Nw, Cpad, Cpad)
        "b": jnp.stack(b_list),                         # (Nb, Cpad) f32
        "wl": wl_idx, "bl": bl_idx,
        "cpad": Cpad,
        "out_size": int(params["wl"].shape[0]),
        "compute_dtype": compute_dtype,
    }


def imu_tcn_forward(x, prep):
    """x: (B, T, input_size) float32 -> (B, output_size) float32."""
    B, T, c_in = x.shape
    Cpad = prep["cpad"]
    out_size = prep["out_size"]
    if c_in < Cpad:                                     # zero-pad channels once
        x = jnp.pad(x, ((0, 0), (0, 0), (0, Cpad - c_in)))
    bB, num_tiles, semantics = _plan_grid(B, T, Cpad)

    kernel = functools.partial(
        _fused_tcn_kernel, plan=prep["plan"], T=T, bB=bB, Cpad=Cpad,
        wl_idx=prep["wl"], bl_idx=prep["bl"],
        compute_dtype=prep["compute_dtype"])

    out = pl.pallas_call(
        kernel,
        out_shape=jax.ShapeDtypeStruct((num_tiles, bB, Cpad), jnp.float32),
        grid=(num_tiles,),
        in_specs=[
            pl.BlockSpec((bB, T, Cpad), lambda g: (g, 0, 0)),
            pl.BlockSpec(prep["w"].shape, lambda g: (0, 0, 0)),  # VMEM-resident
            pl.BlockSpec(prep["b"].shape, lambda g: (0, 0)),     # VMEM-resident
        ],
        out_specs=pl.BlockSpec((1, bB, Cpad), lambda g: (g, 0, 0)),
        compiler_params=pltpu.CompilerParams(
            dimension_semantics=(semantics,),
            vmem_limit_bytes=32 * 1024 * 1024),
    )(x, prep["w"], prep["b"])
    return out.reshape(B, Cpad)[:, :out_size]


# ---------------------------------------------------------------------------
# Deterministic parameter init (shapes from IMUTCNModel.__init__, torch layout)
# ---------------------------------------------------------------------------

def init_params(key, input_size, hidden_sizes, output_size, kernel_size=2):
    blocks = []
    c_in = input_size
    for i, c_out in enumerate(hidden_sizes):
        key, *ks = jax.random.split(key, 7)
        blk = {
            "dilation": 2 ** i,
            "w1": 0.01 * jax.random.normal(ks[0], (c_out, c_in, kernel_size), jnp.float32),
            "b1": 0.01 * jax.random.normal(ks[1], (c_out,), jnp.float32),
            "w2": 0.01 * jax.random.normal(ks[2], (c_out, c_out, kernel_size), jnp.float32),
            "b2": 0.01 * jax.random.normal(ks[3], (c_out,), jnp.float32),
        }
        if c_in != c_out:  # downsample 1x1 conv only when channel count changes
            blk["wd"] = 0.01 * jax.random.normal(ks[4], (c_out, c_in, 1), jnp.float32)
            blk["bd"] = 0.01 * jax.random.normal(ks[5], (c_out,), jnp.float32)
        blocks.append(blk)
        c_in = c_out
    key, k1, k2 = jax.random.split(key, 3)
    wl = jax.random.normal(k1, (output_size, hidden_sizes[-1]), jnp.float32)
    wl = wl / jnp.sqrt(jnp.float32(hidden_sizes[-1]))
    bl = 0.01 * jax.random.normal(k2, (output_size,), jnp.float32)
    return {"blocks": blocks, "wl": wl, "bl": bl}


# ---------------------------------------------------------------------------
# Pure-JAX reference (independent: lax.conv_general_dilated + chomp)
# ---------------------------------------------------------------------------

def ref_forward(x, params, kernel_size=2):
    h = jnp.transpose(x, (0, 2, 1))  # (B, C, T) — mirrors x.permute(0, 2, 1)
    T = h.shape[2]

    def conv(inp, w, b, dil, pad):
        out = jax.lax.conv_general_dilated(
            inp, w, window_strides=(1,), padding=[(pad, pad)],
            rhs_dilation=(dil,), dimension_numbers=("NCH", "OIH", "NCH"))
        return out + b[None, :, None]

    for blk in params["blocks"]:
        d = blk["dilation"]
        pad = (kernel_size - 1) * d
        y = jax.nn.relu(conv(h, blk["w1"], blk["b1"], d, pad)[:, :, :T])
        y = jax.nn.relu(conv(y, blk["w2"], blk["b2"], d, pad)[:, :, :T])
        res = conv(h, blk["wd"], blk["bd"], 1, 0) if "wd" in blk else h
        h = jax.nn.relu(y + res)
    last = h[:, :, -1]
    return last @ params["wl"].T + params["bl"]


# ---------------------------------------------------------------------------

if __name__ == "__main__":
    key = jax.random.PRNGKey(0)
    B, T = 8, 32
    input_size, hidden_sizes, output_size = 6, [32, 32], 8

    key, kp, kx = jax.random.split(key, 3)
    params = init_params(kp, input_size, hidden_sizes, output_size)
    x = jax.random.normal(kx, (B, T, input_size), jnp.float32)

    ref = ref_forward(x, params)

    # f32 path (exact-ish vs. reference)
    prep_f32 = prepare_params(params, jnp.float32)
    out = jax.block_until_ready(imu_tcn_forward(x, prep_f32))
    assert out.shape == (B, output_size), out.shape
    assert jnp.allclose(out, ref, atol=1e-5, rtol=1e-5), (out, ref)

    # bf16 MXU path (default; good on v5e/v6e/v7x — elementwise math stays f32)
    prep_bf16 = prepare_params(params, jnp.bfloat16)
    out_bf16 = jax.block_until_ready(imu_tcn_forward(x, prep_bf16))
    assert out_bf16.shape == (B, output_size), out_bf16.shape
    assert jnp.allclose(out_bf16, ref, atol=5e-2), (out_bf16, ref)

    print("KERNEL_OK")
</pallas_src>

<mosaic_0001>
module attributes {stable_mosaic.version = 11 : i64} {
  func.func @_fused_tcn_kernel(%arg0: i32, %arg1: memref<8x32x32xf32, #tpu.memory_space<vmem>>, %arg2: memref<10x32x32xf32, #tpu.memory_space<vmem>>, %arg3: memref<6x32xf32, #tpu.memory_space<vmem>>, %arg4: memref<1x8x32xf32, #tpu.memory_space<vmem>>) attributes {dimension_semantics = [#tpu.dimension_semantics<arbitrary>], iteration_bounds = array<i64: 1>, scalar_prefetch = 0 : i64, scratch_operands = 0 : i64, tpu.core_type = #tpu.core_type<tc>, window_params = [{transform_indices = @transform_0, window_bounds = array<i64: 8, 32, 32>}, {pipeline_mode = #tpu.pipeline_mode<synchronous>, transform_indices = @transform_1, window_bounds = array<i64: 10, 32, 32>}, {pipeline_mode = #tpu.pipeline_mode<synchronous>, transform_indices = @transform_2, window_bounds = array<i64: 6, 32>}, {transform_indices = @transform_3, window_bounds = array<i64: 1, 8, 32>}]} {
    %c0 = arith.constant 0 : index
    %c0_0 = arith.constant 0 : index
    %c0_1 = arith.constant 0 : index
    %0 = vector.load %arg1[%c0, %c0_0, %c0_1] : memref<8x32x32xf32, #tpu.memory_space<vmem>>, vector<8x32x32xf32>
    %1 = tpu.iota {dimensions = array<i32: 1>} : vector<8x32x32xi32>
    %2 = vector.shape_cast %0 : vector<8x32x32xf32> to vector<256x32xf32>
    %c1_i32 = arith.constant 1 : i32
    %3 = tpu.dynamic_rotate %0 by %c1_i32 dim 1 : vector<8x32x32xf32>, i32 -> vector<8x32x32xf32>
    %c1_i32_2 = arith.constant 1 : i32
    %4 = vector.broadcast %c1_i32_2 : i32 to vector<8x32x32xi32>
    %5 = arith.cmpi sge, %1, %4 : vector<8x32x32xi32>
    %cst = arith.constant 0.000000e+00 : f32
    %6 = vector.broadcast %cst : f32 to vector<8x32x32xf32>
    %7 = arith.select %5, %3, %6 : vector<8x32x32xi1>, vector<8x32x32xf32>
    %8 = vector.shape_cast %7 : vector<8x32x32xf32> to vector<256x32xf32>
    %c0_3 = arith.constant 0 : index
    %c0_4 = arith.constant 0 : index
    %c0_5 = arith.constant 0 : index
    %9 = vector.load %arg2[%c0_3, %c0_4, %c0_5] : memref<10x32x32xf32, #tpu.memory_space<vmem>>, vector<1x32x32xf32>
    %10 = vector.shape_cast %9 : vector<1x32x32xf32> to vector<32x32xf32>
    %cst_6 = arith.constant dense<0.000000e+00> : vector<256x32xf32>
    %11 = tpu.matmul %8, %10, %cst_6 {dimension_numbers = #tpu.dot_dimension_numbers<[1], [0], [0], [1], [0, 0, 1, 1], [], []>} : vector<256x32xf32>, vector<32x32xf32>, vector<256x32xf32> -> vector<256x32xf32>
    %c1 = arith.constant 1 : index
    %c0_7 = arith.constant 0 : index
    %c0_8 = arith.constant 0 : index
    %12 = vector.load %arg2[%c1, %c0_7, %c0_8] : memref<10x32x32xf32, #tpu.memory_space<vmem>>, vector<1x32x32xf32>
    %13 = vector.shape_cast %12 : vector<1x32x32xf32> to vector<32x32xf32>
    %cst_9 = arith.constant dense<0.000000e+00> : vector<256x32xf32>
    %14 = tpu.matmul %2, %13, %cst_9 {dimension_numbers = #tpu.dot_dimension_numbers<[1], [0], [0], [1], [0, 0, 1, 1], [], []>} : vector<256x32xf32>, vector<32x32xf32>, vector<256x32xf32> -> vector<256x32xf32>
    %15 = arith.addf %11, %14 : vector<256x32xf32>
    %c0_10 = arith.constant 0 : index
    %c0_11 = arith.constant 0 : index
    %16 = vector.load %arg3[%c0_10, %c0_11] : memref<6x32xf32, #tpu.memory_space<vmem>>, vector<1x32xf32>
    %17 = vector.broadcast %16 : vector<1x32xf32> to vector<256x32xf32>
    %18 = arith.addf %15, %17 : vector<256x32xf32>
    %cst_12 = arith.constant 0.000000e+00 : f32
    %19 = vector.broadcast %cst_12 : f32 to vector<256x32xf32>
    %20 = arith.maximumf %18, %19 : vector<256x32xf32>
    %21 = vector.shape_cast %20 : vector<256x32xf32> to vector<8x32x32xf32>
    %c1_i32_13 = arith.constant 1 : i32
    %22 = tpu.dynamic_rotate %21 by %c1_i32_13 dim 1 : vector<8x32x32xf32>, i32 -> vector<8x32x32xf32>
    %c1_i32_14 = arith.constant 1 : i32
    %23 = vector.broadcast %c1_i32_14 : i32 to vector<8x32x32xi32>
    %24 = arith.cmpi sge, %1, %23 : vector<8x32x32xi32>
    %cst_15 = arith.constant 0.000000e+00 : f32
    %25 = vector.broadcast %cst_15 : f32 to vector<8x32x32xf32>
    %26 = arith.select %24, %22, %25 : vector<8x32x32xi1>, vector<8x32x32xf32>
    %27 = vector.shape_cast %26 : vector<8x32x32xf32> to vector<256x32xf32>
    %c2 = arith.constant 2 : index
    %c0_16 = arith.constant 0 : index
    %c0_17 = arith.constant 0 : index
    %28 = vector.load %arg2[%c2, %c0_16, %c0_17] : memref<10x32x32xf32, #tpu.memory_space<vmem>>, vector<1x32x32xf32>
    %29 = vector.shape_cast %28 : vector<1x32x32xf32> to vector<32x32xf32>
    %cst_18 = arith.constant dense<0.000000e+00> : vector<256x32xf32>
    %30 = tpu.matmul %27, %29, %cst_18 {dimension_numbers = #tpu.dot_dimension_numbers<[1], [0], [0], [1], [0, 0, 1, 1], [], []>} : vector<256x32xf32>, vector<32x32xf32>, vector<256x32xf32> -> vector<256x32xf32>
    %c3 = arith.constant 3 : index
    %c0_19 = arith.constant 0 : index
    %c0_20 = arith.constant 0 : index
    %31 = vector.load %arg2[%c3, %c0_19, %c0_20] : memref<10x32x32xf32, #tpu.memory_space<vmem>>, vector<1x32x32xf32>
    %32 = vector.shape_cast %31 : vector<1x32x32xf32> to vector<32x32xf32>
    %cst_21 = arith.constant dense<0.000000e+00> : vector<256x32xf32>
    %33 = tpu.matmul %20, %32, %cst_21 {dimension_numbers = #tpu.dot_dimension_numbers<[1], [0], [0], [1], [0, 0, 1, 1], [], []>} : vector<256x32xf32>, vector<32x32xf32>, vector<256x32xf32> -> vector<256x32xf32>
    %34 = arith.addf %30, %33 : vector<256x32xf32>
    %c1_22 = arith.constant 1 : index
    %c0_23 = arith.constant 0 : index
    %35 = vector.load %arg3[%c1_22, %c0_23] : memref<6x32xf32, #tpu.memory_space<vmem>>, vector<1x32xf32>
    %36 = vector.broadcast %35 : vector<1x32xf32> to vector<256x32xf32>
    %37 = arith.addf %34, %36 : vector<256x32xf32>
    %cst_24 = arith.constant 0.000000e+00 : f32
    %38 = vector.broadcast %cst_24 : f32 to vector<256x32xf32>
    %39 = arith.maximumf %37, %38 : vector<256x32xf32>
    %c4 = arith.constant 4 : index
    %c0_25 = arith.constant 0 : index
    %c0_26 = arith.constant 0 : index
    %40 = vector.load %arg2[%c4, %c0_25, %c0_26] : memref<10x32x32xf32, #tpu.memory_space<vmem>>, vector<1x32x32xf32>
    %41 = vector.shape_cast %40 : vector<1x32x32xf32> to vector<32x32xf32>
    %cst_27 = arith.constant dense<0.000000e+00> : vector<256x32xf32>
    %42 = tpu.matmul %2, %41, %cst_27 {dimension_numbers = #tpu.dot_dimension_numbers<[1], [0], [0], [1], [0, 0, 1, 1], [], []>} : vector<256x32xf32>, vector<32x32xf32>, vector<256x32xf32> -> vector<256x32xf32>
    %c2_28 = arith.constant 2 : index
    %c0_29 = arith.constant 0 : index
    %43 = vector.load %arg3[%c2_28, %c0_29] : memref<6x32xf32, #tpu.memory_space<vmem>>, vector<1x32xf32>
    %44 = vector.broadcast %43 : vector<1x32xf32> to vector<256x32xf32>
    %45 = arith.addf %42, %44 : vector<256x32xf32>
    %46 = arith.addf %39, %45 : vector<256x32xf32>
    %cst_30 = arith.constant 0.000000e+00 : f32
    %47 = vector.broadcast %cst_30 : f32 to vector<256x32xf32>
    %48 = arith.maximumf %46, %47 : vector<256x32xf32>
    %49 = vector.shape_cast %48 : vector<256x32xf32> to vector<8x32x32xf32>
    %50 = vector.extract_strided_slice %49 {offsets = [0, 31, 0], sizes = [8, 1, 32], strides = [1, 1, 1]} : vector<8x32x32xf32> to vector<8x1x32xf32>
    %51 = vector.shape_cast %50 : vector<8x1x32xf32> to vector<8x32xf32>
    %52 = vector.extract_strided_slice %49 {offsets = [0, 29, 0], sizes = [8, 1, 32], strides = [1, 1, 1]} : vector<8x32x32xf32> to vector<8x1x32xf32>
    %53 = vector.shape_cast %52 : vector<8x1x32xf32> to vector<8x32xf32>
    %54 = vector.extract_strided_slice %49 {offsets = [0, 27, 0], sizes = [8, 1, 32], strides = [1, 1, 1]} : vector<8x32x32xf32> to vector<8x1x32xf32>
    %55 = vector.shape_cast %54 : vector<8x1x32xf32> to vector<8x32xf32>
    %c5 = arith.constant 5 : index
    %c0_31 = arith.constant 0 : index
    %c0_32 = arith.constant 0 : index
    %56 = vector.load %arg2[%c5, %c0_31, %c0_32] : memref<10x32x32xf32, #tpu.memory_space<vmem>>, vector<1x32x32xf32>
    %57 = vector.shape_cast %56 : vector<1x32x32xf32> to vector<32x32xf32>
    %cst_33 = arith.constant dense<0.000000e+00> : vector<8x32xf32>
    %58 = tpu.matmul %53, %57, %cst_33 {dimension_numbers = #tpu.dot_dimension_numbers<[1], [0], [0], [1], [0, 0, 1, 1], [], []>} : vector<8x32xf32>, vector<32x32xf32>, vector<8x32xf32> -> vector<8x32xf32>
    %c6 = arith.constant 6 : index
    %c0_34 = arith.constant 0 : index
    %c0_35 = arith.constant 0 : index
    %59 = vector.load %arg2[%c6, %c0_34, %c0_35] : memref<10x32x32xf32, #tpu.memory_space<vmem>>, vector<1x32x32xf32>
    %60 = vector.shape_cast %59 : vector<1x32x32xf32> to vector<32x32xf32>
    %cst_36 = arith.constant dense<0.000000e+00> : vector<8x32xf32>
    %61 = tpu.matmul %51, %60, %cst_36 {dimension_numbers = #tpu.dot_dimension_numbers<[1], [0], [0], [1], [0, 0, 1, 1], [], []>} : vector<8x32xf32>, vector<32x32xf32>, vector<8x32xf32> -> vector<8x32xf32>
    %62 = arith.addf %58, %61 : vector<8x32xf32>
    %c3_37 = arith.constant 3 : index
    %c0_38 = arith.constant 0 : index
    %63 = vector.load %arg3[%c3_37, %c0_38] : memref<6x32xf32, #tpu.memory_space<vmem>>, vector<1x32xf32>
    %64 = vector.broadcast %63 : vector<1x32xf32> to vector<8x32xf32>
    %65 = arith.addf %62, %64 : vector<8x32xf32>
    %cst_39 = arith.constant 0.000000e+00 : f32
    %66 = vector.broadcast %cst_39 : f32 to vector<8x32xf32>
    %67 = arith.maximumf %65, %66 : vector<8x32xf32>
    %c5_40 = arith.constant 5 : index
    %c0_41 = arith.constant 0 : index
    %c0_42 = arith.constant 0 : index
    %68 = vector.load %arg2[%c5_40, %c0_41, %c0_42] : memref<10x32x32xf32, #tpu.memory_space<vmem>>, vector<1x32x32xf32>
    %69 = vector.shape_cast %68 : vector<1x32x32xf32> to vector<32x32xf32>
    %cst_43 = arith.constant dense<0.000000e+00> : vector<8x32xf32>
    %70 = tpu.matmul %55, %69, %cst_43 {dimension_numbers = #tpu.dot_dimension_numbers<[1], [0], [0], [1], [0, 0, 1, 1], [], []>} : vector<8x32xf32>, vector<32x32xf32>, vector<8x32xf32> -> vector<8x32xf32>
    %c6_44 = arith.constant 6 : index
    %c0_45 = arith.constant 0 : index
    %c0_46 = arith.constant 0 : index
    %71 = vector.load %arg2[%c6_44, %c0_45, %c0_46] : memref<10x32x32xf32, #tpu.memory_space<vmem>>, vector<1x32x32xf32>
    %72 = vector.shape_cast %71 : vector<1x32x32xf32> to vector<32x32xf32>
    %cst_47 = arith.constant dense<0.000000e+00> : vector<8x32xf32>
    %73 = tpu.matmul %53, %72, %cst_47 {dimension_numbers = #tpu.dot_dimension_numbers<[1], [0], [0], [1], [0, 0, 1, 1], [], []>} : vector<8x32xf32>, vector<32x32xf32>, vector<8x32xf32> -> vector<8x32xf32>
    %74 = arith.addf %70, %73 : vector<8x32xf32>
    %c3_48 = arith.constant 3 : index
    %c0_49 = arith.constant 0 : index
    %75 = vector.load %arg3[%c3_48, %c0_49] : memref<6x32xf32, #tpu.memory_space<vmem>>, vector<1x32xf32>
    %76 = vector.broadcast %75 : vector<1x32xf32> to vector<8x32xf32>
    %77 = arith.addf %74, %76 : vector<8x32xf32>
    %cst_50 = arith.constant 0.000000e+00 : f32
    %78 = vector.broadcast %cst_50 : f32 to vector<8x32xf32>
    %79 = arith.maximumf %77, %78 : vector<8x32xf32>
    %c7 = arith.constant 7 : index
    %c0_51 = arith.constant 0 : index
    %c0_52 = arith.constant 0 : index
    %80 = vector.load %arg2[%c7, %c0_51, %c0_52] : memref<10x32x32xf32, #tpu.memory_space<vmem>>, vector<1x32x32xf32>
    %81 = vector.shape_cast %80 : vector<1x32x32xf32> to vector<32x32xf32>
    %cst_53 = arith.constant dense<0.000000e+00> : vector<8x32xf32>
    %82 = tpu.matmul %79, %81, %cst_53 {dimension_numbers = #tpu.dot_dimension_numbers<[1], [0], [0], [1], [0, 0, 1, 1], [], []>} : vector<8x32xf32>, vector<32x32xf32>, vector<8x32xf32> -> vector<8x32xf32>
    %c8 = arith.constant 8 : index
    %c0_54 = arith.constant 0 : index
    %c0_55 = arith.constant 0 : index
    %83 = vector.load %arg2[%c8, %c0_54, %c0_55] : memref<10x32x32xf32, #tpu.memory_space<vmem>>, vector<1x32x32xf32>
    %84 = vector.shape_cast %83 : vector<1x32x32xf32> to vector<32x32xf32>
    %cst_56 = arith.constant dense<0.000000e+00> : vector<8x32xf32>
    %85 = tpu.matmul %67, %84, %cst_56 {dimension_numbers = #tpu.dot_dimension_numbers<[1], [0], [0], [1], [0, 0, 1, 1], [], []>} : vector<8x32xf32>, vector<32x32xf32>, vector<8x32xf32> -> vector<8x32xf32>
    %86 = arith.addf %82, %85 : vector<8x32xf32>
    %c4_57 = arith.constant 4 : index
    %c0_58 = arith.constant 0 : index
    %87 = vector.load %arg3[%c4_57, %c0_58] : memref<6x32xf32, #tpu.memory_space<vmem>>, vector<1x32xf32>
    %88 = vector.broadcast %87 : vector<1x32xf32> to vector<8x32xf32>
    %89 = arith.addf %86, %88 : vector<8x32xf32>
    %cst_59 = arith.constant 0.000000e+00 : f32
    %90 = vector.broadcast %cst_59 : f32 to vector<8x32xf32>
    %91 = arith.maximumf %89, %90 : vector<8x32xf32>
    %92 = arith.addf %91, %51 : vector<8x32xf32>
    %cst_60 = arith.constant 0.000000e+00 : f32
    %93 = vector.broadcast %cst_60 : f32 to vector<8x32xf32>
    %94 = arith.maximumf %92, %93 : vector<8x32xf32>
    %c9 = arith.constant 9 : index
    %c0_61 = arith.constant 0 : index
    %c0_62 = arith.constant 0 : index
    %95 = vector.load %arg2[%c9, %c0_61, %c0_62] : memref<10x32x32xf32, #tpu.memory_space<vmem>>, vector<1x32x32xf32>
    %96 = vector.shape_cast %95 : vector<1x32x32xf32> to vector<32x32xf32>
    %cst_63 = arith.constant dense<0.000000e+00> : vector<8x32xf32>
    %97 = tpu.matmul %94, %96, %cst_63 {dimension_numbers = #tpu.dot_dimension_numbers<[1], [0], [0], [1], [0, 0, 1, 1], [], []>} : vector<8x32xf32>, vector<32x32xf32>, vector<8x32xf32> -> vector<8x32xf32>
    %c5_64 = arith.constant 5 : index
    %c0_65 = arith.constant 0 : index
    %98 = vector.load %arg3[%c5_64, %c0_65] : memref<6x32xf32, #tpu.memory_space<vmem>>, vector<1x32xf32>
    %99 = vector.broadcast %98 : vector<1x32xf32> to vector<8x32xf32>
    %100 = arith.addf %97, %99 : vector<8x32xf32>
    %c0_66 = arith.constant 0 : index
    %c0_67 = arith.constant 0 : index
    %c0_68 = arith.constant 0 : index
    %101 = vector.load %arg4[%c0_66, %c0_67, %c0_68] : memref<1x8x32xf32, #tpu.memory_space<vmem>>, vector<1x8x32xf32>
    %102 = vector.shape_cast %101 : vector<1x8x32xf32> to vector<8x32xf32>
    %103 = vector.shape_cast %100 : vector<8x32xf32> to vector<1x8x32xf32>
    tpu.vector_store %arg4[%c0_66, %c0_67, %c0_68], %103 {strides = array<i32>} : memref<1x8x32xf32, #tpu.memory_space<vmem>>, vector<1x8x32xf32>,
    return
  }
  func.func @transform_0(%arg0: i32) -> (i32, i32, i32) {
    %c0_i32 = arith.constant 0 : i32
    %c0_i32_0 = arith.constant 0 : i32
    %c0_i32_1 = arith.constant 0 : i32
    return %arg0, %c0_i32, %c0_i32_0 : i32, i32, i32
  }
  func.func @transform_1(%arg0: i32) -> (i32, i32, i32) {
    %c0_i32 = arith.constant 0 : i32
    %c0_i32_0 = arith.constant 0 : i32
    %c0_i32_1 = arith.constant 0 : i32
    %c0_i32_2 = arith.constant 0 : i32
    return %c0_i32, %c0_i32_0, %c0_i32_1 : i32, i32, i32
  }
  func.func @transform_2(%arg0: i32) -> (i32, i32) {
    %c0_i32 = arith.constant 0 : i32
    %c0_i32_0 = arith.constant 0 : i32
    %c0_i32_1 = arith.constant 0 : i32
    return %c0_i32, %c0_i32_0 : i32, i32
  }
  func.func @transform_3(%arg0: i32) -> (i32, i32, i32) {
    %c0_i32 = arith.constant 0 : i32
    %c0_i32_0 = arith.constant 0 : i32
    %c0_i32_1 = arith.constant 0 : i32
    return %arg0, %c0_i32, %c0_i32_0 : i32, i32, i32
  }
}

</mosaic_0001>

<bundles_post_ra>
// kernel: tpu_custom_call.1
= control target key start
LH: loop header
LB: loop body
LE: loop exit
PB: predicated region body
PF: predicated region fallthrough
CT: control target
= control target key end

     0   :  { %8 = vsyncpa [#allocation3], 0  ;;  %s4242_s0 = inlined_call_operand.hbm [shape: f32[8,32,32], index: 0, kind: input, shape index: {}]   ;;  %s4243_s1 = inlined_call_operand.hbm [shape: f32[10,32,32], index: 1, kind: input, shape index: {}]   ;;  %s4244_s2 = inlined_call_operand.hbm [shape: f32[6,32], index: 2, kind: input, shape index: {}]   ;;  %s4245_s3 = inlined_call_operand.hbm [shape: f32[1,8,32], index: 3, kind: output, shape index: {}]  }
   0x1   :  { %9 = vsyncpa [#allocation6], 0 }
   0x2   :  { %10 = vsyncpa [#allocation4], 0  ;;  %s3451_s12 = smov [#allocation5]   ;;  %s3452_s14 = smov [#allocation2]  }
   0x3   :  { %s28_s13 = sshll.u32 %s3451_s12, 4  ;;  %s16_s15 = sshll.u32 %s3452_s14, 4  ;;  %s29_s13 = int_to_ptr.vmem [resolvable:$true] %s28_s13  ;;  %s3480_s15 = int_to_ptr.vmem [resolvable:$true] %s16_s15 }
   0x4   :  { %s3357_s18 = scalar_lea.hbm %s4243_s1, 5120 }
   0x5   :  { %p3358_p0 = scmp.ne.s32.totalorder %s4243_s1, %s3357_s18  ;;  %p3361_p1 = scmp.lt.u32.totalorder %s3357_s18, %s4243_s1 }
   0x7   :  { %p3363_p2 = pnand %p3361_p1, %p3358_p0 }
   0x9   :  { %3366 = shalt.err (!%p3363_p2)
}
   0xa   :  { %s3367_s23 = scalar_lea.vmem %s29_s13, 5120  ;;  %p3372_p4 = scmp.lt.s32.totalorder %s29_s13, %s29_s13 }
   0xb   :  { %p3368_p3 = scmp.ne.s32.totalorder %s29_s13, %s3367_s23  ;;  %p3373_p5 = scmp.lt.s32.totalorder %s3367_s23, %s3367_s23 }
   0xd   :  { %p3374_p6 = por %p3373_p5, %p3372_p4 }
   0xf   :  { %p3375_p7 = pnand %p3374_p6, %p3368_p3 }
  0x11   :  { %3378 = shalt.err (!%p3375_p7)
}
  0x12   :  { %s3453_s24 = smov 128   ;;  %s3454_s25 = smov 8  }
  0x13   :  { %34 = dma.hbm_to_vmem [thread:$0]  %s4243_s1, 5120, %s29_s13, [#allocation6], %s3453_s24, %s3453_s24, %s3454_s25  }
  0x14   :  { %s3379_s30 = scalar_lea.hbm %s4242_s0, 4096 }
  0x15   :  { %p3380_p8 = scmp.ne.s32.totalorder %s4242_s0, %s3379_s30  ;;  %p3383_p9 = scmp.lt.u32.totalorder %s3379_s30, %s4242_s0 }
  0x17   :  { %p3385_p10 = pnand %p3383_p9, %p3380_p8 }
  0x19   :  { %3388 = shalt.err (!%p3385_p10)
}
  0x1a   :  { %s3389_s8 = scalar_lea.vmem %s3480_s15, 4096  ;;  %p3394_p12 = scmp.lt.s32.totalorder %s3480_s15, %s3480_s15 }
  0x1b   :  { %p3390_p11 = scmp.ne.s32.totalorder %s3480_s15, %s3389_s8  ;;  %p3395_p13 = scmp.lt.s32.totalorder %s3389_s8, %s3389_s8 }
  0x1d   :  { %p3396_p0 = por %p3395_p13, %p3394_p12 }
  0x1f   :  { %p3397_p1 = pnand %p3396_p0, %p3390_p11 }
  0x21   :  { %3400 = shalt.err (!%p3397_p1)
}
  0x22   :  { %22 = dma.hbm_to_vmem [thread:$0]  %s4242_s0, 4096, %s3480_s15, [#allocation3], %s3453_s24, %s3453_s24, %s3454_s25  }
  0x23   :  { %s3455_s10 = smov [#allocation7]   ;;  %s3401_s14 = scalar_lea.hbm %s4244_s2, 128 }
  0x24   :  { %s41_s11 = sshll.u32 %s3455_s10, 4  ;;  %p3402_p2 = scmp.ne.s32.totalorder %s4244_s2, %s3401_s14  ;;  %s42_s11 = int_to_ptr.vmem [resolvable:$true] %s41_s11 }
  0x25   :  { %p3405_p3 = scmp.lt.u32.totalorder %s3401_s14, %s4244_s2 }
  0x27   :  { %p3407_p4 = pnand %p3405_p3, %p3402_p2 }
  0x29   :  { %3410 = shalt.err (!%p3407_p4)
}
  0x2a   :  { %s3411_s20 = scalar_lea.vmem %s42_s11, 128  ;;  %p3416_p6 = scmp.lt.s32.totalorder %s42_s11, %s42_s11 }
  0x2b   :  { %p3412_p5 = scmp.ne.s32.totalorder %s42_s11, %s3411_s20  ;;  %p3417_p7 = scmp.lt.s32.totalorder %s3411_s20, %s3411_s20 }
  0x2d   :  { %p3418_p8 = por %p3417_p7, %p3416_p6 }
  0x2f   :  { %p3419_p9 = pnand %p3418_p8, %p3412_p5 }
  0x31   :  { %3422 = shalt.err (!%p3419_p9)
}
  0x32   :  { %44 = dma.hbm_to_vmem [thread:$0]  %s4244_s2, 128, %s42_s11, [#allocation6]  }
  0x33   :  { %3445 = dma.done.wait [#allocation3], 4096  }
  0x34   :  { %3446 = vsyncadd [#allocation3], 4294963200 }
  0x35   :  { %3447 = dma.done.wait [#allocation6], 5248  }
  0x36   :  { %3448 = vsyncadd [#allocation6], 4294962048  ;;  %vm201_vm0 = vcmask 261120   ;;  %v197_v0 = vld [vmem:[#allocation5 + $0x20] sm:$0xff]  ;;  %v198_v1 = vld [vmem:[#allocation5 + $0x28] sm:$0xff]  ;;  %v86_v40 = vlaneseq  ;;  %vm3457_vm3 = vmmov 0  }
  0x37   :  { %v199_v2 = vld [vmem:[#allocation5 + $0x30] sm:$0xff]  ;;  %v3234_v3 = vpack.c.bf16 %v198_v1, %v197_v0  ;;  %v200_v4 = vld [vmem:[#allocation5 + $0x38] sm:$0xff]  ;;  %v3523_v5 = vld [vmem:[#allocation2] sm:$0xff]  ;;  %vm1881_vm4 = vcmask 1041409   ;;  %vm1884_vm5 = vcmask 1042434   ;;  %vm1887_vm6 = vcmask 1043459  }
  0x38   :  { %v3238_v6 = vpack.c.bf16 %v200_v4, %v199_v2  ;;  %2885 = vmatprep.mubr.msk.f32.mxu0 %vm201_vm0, %v3523_v5  ;;  %v192_v7 = vld [vmem:[#allocation5] sm:$0xff]  ;;  %v193_v8 = vld [vmem:[#allocation5 + $0x8] sm:$0xff]  ;;  %v194_v11 = vld [vmem:[#allocation5 + $0x10] sm:$0xff]  ;;  %v3629_v43 = vshrl.u32 %v86_v40, 7  ;;  %v91_v46 = vrot.slane %v3523_v5, 7  ;;  %vm1890_vm7 = vcmask 1044484  }
  0x39   :  { %3235 = vmatprep.subr.bf16.mxu0 %v3234_v3  ;;  %v3242_v9 = vpack.c.bf16 %v193_v8, %v192_v7  ;;  %v3527_v10 = vld [vmem:[#allocation2 + $0x8] sm:$0xff]  ;;  %v195_v12 = vld [vmem:[#allocation5 + $0x18] sm:$0xff]  ;;  %v3529_v13 = vld [vmem:[#allocation2 + $0x10] sm:$0xff]  ;;  %vm1893_vm8 = vcmask 1045509   ;;  %vm1896_vm9 = vcmask 1046534   ;;  %vm1898_vm10 = vcmask 1047559  }
  0x3a   :  { %3237 = vmatpush3.bf16.msra.mxu0 %v3234_v3  ;;  %v3246_v14 = vpack.c.bf16 %v195_v12, %v194_v11  ;;  %v3535_v15 = vld [vmem:[#allocation2 + $0x18] sm:$0xff]  ;;  %v3537_v16 = vld [vmem:[#allocation2 + $0x20] sm:$0xff]  ;;  %v3543_v17 = vld [vmem:[#allocation2 + $0x28] sm:$0xff]  ;;  %vm123_vm1 = vcmp.lt.s32.totalorder %v3629_v43, 1  ;;  %vm156_vm2 = vcmp.ge.s32.totalorder %v3629_v43, 1  ;;  %v99_v51 = vrot.slane %v3527_v10, 7 }
  0x3b   :  { %3239 = vmatprep.subr.bf16.mxu0 %v3238_v6  ;;  %v3545_v18 = vld [vmem:[#allocation2 + $0x30] sm:$0xff]  ;;  %v1015_v19 = vld [vmem:[#allocation5 + $0x60] sm:$0xff]  ;;  %v1016_v20 = vld [vmem:[#allocation5 + $0x68] sm:$0xff]  ;;  %v115_v47 = vrot.slane %v3535_v15, 7  ;;  %v107_v53 = vrot.slane %v3529_v13, 7  ;;  %v92_v55 = vrot.slane %v3537_v16, 7 }
  0x3c   :  { %v3551_v21 = vld [vmem:[#allocation2 + $0x38] sm:$0xff]  ;;  %v3553_v22 = vld [vmem:[#allocation2 + $0x40] sm:$0xff]  ;;  %v3250_v23 = vpack.c.bf16 %v1016_v20, %v1015_v19  ;;  %v3559_v24 = vld [vmem:[#allocation2 + $0x48] sm:$0xff]  ;;  %v140_v57 = vsel %vm123_vm1, %v91_v46, %v99_v51  ;;  %v100_v60 = vrot.slane %v3543_v17, 7  ;;  %v108_v62 = vrot.slane %v3545_v18, 7  ;;  %s3459_s2 = smov [#allocation8]  }
  0x3d   :  { %v3561_v25 = vld [vmem:[#allocation2 + $0x50] sm:$0xff]  ;;  %v3567_v26 = vld [vmem:[#allocation2 + $0x58] sm:$0xff]  ;;  %v3569_v27 = vld [vmem:[#allocation2 + $0x60] sm:$0xff]  ;;  %v148_v50 = vsel %vm123_vm1, %v115_v47, %v91_v46  ;;  %v116_v56 = vrot.slane %v3551_v21, 7  ;;  %v132_v58 = vsel %vm123_vm1, %v99_v51, %v107_v53  ;;  %v124_v61 = vsel %vm123_vm1, %v107_v53, %v115_v47  ;;  %s2479_s21 = sshll.u32 %s3459_s2, 4  ;;  %s2480_s21 = int_to_ptr.vmem [resolvable:$true] %s2479_s21 }
  0x3e   :  { %3241 = vmatpush3.bf16.msra.mxu0 %v3238_v6  ;;  %3251 = vmatprep.subr.bf16.mxu1 %v3250_v23  ;;  %v3575_v28 = vld [vmem:[#allocation2 + $0x68] sm:$0xff]  ;;  %v3577_v29 = vld [vmem:[#allocation2 + $0x70] sm:$0xff]  ;;  %v3583_v30 = vld [vmem:[#allocation2 + $0x78] sm:$0xff]  ;;  %v160_v54 = vsel %vm156_vm2, %v148_v50, 0.0  ;;  %v93_v0 = vrot.slane %v3553_v22, 7  ;;  %v117_v1 = vrot.slane %v3567_v26, 7  ;;  %v141_v2 = vsel %vm123_vm1, %v92_v55, %v100_v60  ;;  %p3428_p11 = scmp.lt.s32.totalorder %s2480_s21, %s2480_s21 }
  0x3f   :  { %3243 = vmatprep.subr.bf16.mxu0 %v3242_v9  ;;  %3253 = vmatpush3.bf16.msra.mxu1 %v3250_v23  ;;  %v3585_v31 = vld [vmem:[#allocation2 + $0x80] sm:$0xff]  ;;  %v3591_v32 = vld [vmem:[#allocation2 + $0x88] sm:$0xff]  ;;  %v3593_v33 = vld [vmem:[#allocation2 + $0x90] sm:$0xff]  ;;  %v149_v59 = vsel %vm123_vm1, %v116_v56, %v92_v55  ;;  %v133_v3 = vsel %vm123_vm1, %v100_v60, %v108_v62  ;;  %v101_v6 = vrot.slane %v3559_v24, 7  ;;  %v125_v7 = vsel %vm123_vm1, %v108_v62, %v116_v56  ;;  %s3423_s22 = scalar_lea.vmem %s2480_s21, 128 }
  0x40   :  { %v3599_v34 = vld [vmem:[#allocation2 + $0x98] sm:$0xff]  ;;  %v3601_v35 = vld [vmem:[#allocation2 + $0xa0] sm:$0xff]  ;;  %v3607_v36 = vld [vmem:[#allocation2 + $0xa8] sm:$0xff]  ;;  %v164_v63 = vsel %vm156_vm2, %v149_v59, 0.0  ;;  %v150_v4 = vsel %vm123_vm1, %v117_v1, %v93_v0  ;;  %v109_v8 = vrot.slane %v3561_v25, 7  ;;  %v94_v11 = vrot.slane %v3569_v27, 7  ;;  %p3424_p10 = scmp.ne.s32.totalorder %s2480_s21, %s3423_s22  ;;  %p3429_p12 = scmp.lt.s32.totalorder %s3423_s22, %s3423_s22 }
  0x41   :  { %2886 = vmatmul.mubr.msk.f32.vlgmr.msra.gmra.mrb[0].mxu0 %vm201_vm0, %v3527_v10  ;;  %v3609_v37 = vld [vmem:[#allocation2 + $0xb0] sm:$0xff]  ;;  %v3615_v38 = vld [vmem:[#allocation2 + $0xb8] sm:$0xff]  ;;  %v3617_v39 = vld [vmem:[#allocation2 + $0xc0] sm:$0xff]  ;;  %v118_v12 = vrot.slane %v3583_v30, 7  ;;  %v102_v23 = vrot.slane %v3575_v28, 7  ;;  %v110_v46 = vrot.slane %v3577_v29, 7 }
  0x42   :  { %3245 = vmatpush3.bf16.msra.mxu0 %v3242_v9  ;;  %2888 = vmatprep.mubr.msk.f32.mxu0 %vm201_vm0, %v3529_v13  ;;  %v3623_v41 = vld [vmem:[#allocation2 + $0xc8] sm:$0xff]  ;;  %v3625_v42 = vld [vmem:[#allocation2 + $0xd0] sm:$0xff]  ;;  %v3633_v44 = vld [vmem:[#allocation2 + $0xd8] sm:$0xff]  ;;  %v168_v9 = vsel %vm156_vm2, %v150_v4, 0.0  ;;  %v134_v19 = vsel %vm123_vm1, %v101_v6, %v109_v8  ;;  %v126_v40 = vsel %vm123_vm1, %v109_v8, %v117_v1  ;;  %v95_v50 = vrot.slane %v3585_v31, 7  ;;  %p3430_p13 = por %p3429_p12, %p3428_p11 }
  0x43   :  { %3247 = vmatprep.subr.bf16.mxu0 %v3246_v14  ;;  %v3635_v45 = vld [vmem:[#allocation2 + $0xe0] sm:$0xff]  ;;  %v3644_v48 = vld [vmem:[#allocation2 + $0xe8] sm:$0xff]  ;;  %v3646_v49 = vld [vmem:[#allocation2 + $0xf0] sm:$0xff]  ;;  %v151_v20 = vsel %vm123_vm1, %v118_v12, %v94_v11  ;;  %v119_v51 = vrot.slane %v3599_v34, 7  ;;  %v143_v53 = vsel %vm123_vm1, %v94_v11, %v102_v23  ;;  %v103_v56 = vrot.slane %v3591_v32, 7 }
  0x44   :  { %v3656_v52 = vld [vmem:[#allocation2 + $0xf8] sm:$0xff]  ;;  %v172_v47 = vsel %vm156_vm2, %v151_v20, 0.0  ;;  %v96_v60 = vrot.slane %v3601_v35, 7  ;;  %v104_v1 = vrot.slane %v3607_v36, 7  ;;  %v3456_v43 = vmov 0.0|0.0   ;;  %p3431_p0 = pnand %p3430_p13, %p3424_p10 }
  0x45   :  { %2889 = vmatmul.mubr.msk.f32.gmra.mrb[2].mxu0 %vm201_vm0, %v3535_v15  ;;  %v152_v55 = vsel %vm123_vm1, %v119_v51, %v95_v50  ;;  %v144_v62 = vsel %vm123_vm1, %v95_v50, %v103_v56 }
  0x46   :  { %2891 = vmatprep.mubr.msk.f32.mxu0 %vm201_vm0, %v3537_v16  ;;  %3249 = vmatpush3.bf16.msra.mxu0 %v3246_v14  ;;  %v142_v14 = vsel %vm123_vm1, %v93_v0, %v101_v6  ;;  %v176_v59 = vsel %vm156_vm2, %v152_v55, 0.0  ;;  %v97_v6 = vrot.slane %v3617_v39, 7  ;;  %v145_v8 = vsel %vm123_vm1, %v96_v60, %v104_v1 }
  0x49   :  { %2892 = vmatmul.mubr.msk.f32.gmra.mrb[4].mxu0 %vm201_vm0, %v3543_v17 }
  0x4a   :  { %2894 = vmatprep.mubr.msk.f32.mxu0 %vm201_vm0, %v3545_v18 }
  0x4d   :  { %2895 = vmatmul.mubr.msk.f32.gmra.mrb[6].mxu0 %vm201_vm0, %v3551_v21 }
  0x4e   :  { %2897 = vmatprep.mubr.msk.f32.mxu0 %vm201_vm0, %v3553_v22 }
  0x51   :  { %2898 = vmatmul.mubr.msk.f32.gmra.mrb[8].mxu0 %vm201_vm0, %v3559_v24 }
  0x52   :  { %2900 = vmatprep.mubr.msk.f32.mxu0 %vm201_vm0, %v3561_v25 }
  0x55   :  { %2901 = vmatmul.mubr.msk.f32.gmra.mrb[10].mxu0 %vm201_vm0, %v3567_v26 }
  0x56   :  { %2903 = vmatprep.mubr.msk.f32.mxu0 %vm201_vm0, %v3569_v27 }
  0x59   :  { %2904 = vmatmul.mubr.msk.f32.gmra.mrb[12].mxu0 %vm201_vm0, %v3575_v28 }
  0x5a   :  { %2906 = vmatprep.mubr.msk.f32.mxu0 %vm201_vm0, %v3577_v29 }
  0x5d   :  { %2907 = vmatmul.mubr.msk.f32.gmra.mrb[14].mxu0 %vm201_vm0, %v3583_v30 }
  0x5e   :  { %2909 = vmatprep.mubr.msk.f32.mxu0 %vm201_vm0, %v3585_v31 }
  0x61   :  { %2910 = vmatmul.mubr.msk.f32.gmra.mrb[16].mxu0 %vm201_vm0, %v3591_v32 }
  0x62   :  { %2912 = vmatprep.mubr.msk.f32.mxu0 %vm201_vm0, %v3593_v33 }
  0x65   :  { %2913 = vmatmul.mubr.msk.f32.gmra.mrb[18].mxu0 %vm201_vm0, %v3599_v34 }
  0x66   :  { %2915 = vmatprep.mubr.msk.f32.mxu0 %vm201_vm0, %v3601_v35 }
  0x69   :  { %2916 = vmatmul.mubr.msk.f32.gmra.mrb[20].mxu0 %vm201_vm0, %v3607_v36 }
  0x6a   :  { %2918 = vmatprep.mubr.msk.f32.mxu0 %vm201_vm0, %v3609_v37 }
  0x6d   :  { %2919 = vmatmul.mubr.msk.f32.gmra.mrb[22].mxu0 %vm201_vm0, %v3615_v38 }
  0x6e   :  { %2921 = vmatprep.mubr.msk.f32.mxu0 %vm201_vm0, %v3617_v39 }
  0x71   :  { %2922 = vmatmul.mubr.msk.f32.gmra.mrb[24].mxu0 %vm201_vm0, %v3623_v41 }
  0x72   :  { %2924 = vmatprep.mubr.msk.f32.mxu0 %vm201_vm0, %v3625_v42 }
  0x75   :  { %2925 = vmatmul.mubr.msk.f32.gmra.mrb[26].mxu0 %vm201_vm0, %v3633_v44 }
  0x76   :  { %2927 = vmatprep.mubr.msk.f32.mxu0 %vm201_vm0, %v3635_v45 }
  0x79   :  { %2928 = vmatmul.mubr.msk.f32.gmra.mrb[28].mxu0 %vm201_vm0, %v3644_v48 }
  0x7a   :  { %2930 = vmatprep.mubr.msk.f32.mxu0 %vm201_vm0, %v3646_v49 }
  0x7d   :  { %2931 = vmatmul.mubr.msk.f32.gmra.mrb[30].mxu0 %vm201_vm0, %v3656_v52 }
  0x7e   :  { %2941 = vmatprep.mubr.msk.f32.mxu0 %vm201_vm0, %v160_v54  ;;  %v135_v54 = vsel %vm123_vm1, %v102_v23, %v110_v46  ;;  %v98_v23 = vrot.slane %v3635_v45, 7 }
  0x81   :  { %2942 = vmatmul.mubr.msk.f32.vlgmr.msra.gmra.mrb[0].mxu0 %vm201_vm0, %v140_v57  ;;  %v127_v57 = vsel %vm123_vm1, %v110_v46, %v118_v12  ;;  %v105_v12 = vrot.slane %v3623_v41, 7 }
  0x82   :  { %2944 = vmatprep.mubr.msk.f32.mxu0 %vm201_vm0, %v132_v58  ;;  %v111_v58 = vrot.slane %v3593_v33, 7 }
  0x83   :  { %v146_v46 = vsel %vm123_vm1, %v97_v6, %v105_v12 }
  0x85   :  { %2945 = vmatmul.mubr.msk.f32.gmra.mrb[2].mxu0 %vm201_vm0, %v124_v61  ;;  %v120_v61 = vrot.slane %v3615_v38, 7 }
  0x86   :  { %2947 = vmatprep.mubr.msk.f32.mxu0 %vm201_vm0, %v164_v63  ;;  %v136_v63 = vsel %vm123_vm1, %v103_v56, %v111_v58 }
  0x87   :  { %v153_v0 = vsel %vm123_vm1, %v120_v61, %v96_v60  ;;  %v1018_v60 = vld [vmem:[#allocation5 + $0x78] sm:$0xff] }
  0x88   :  { %v180_v4 = vsel %vm156_vm2, %v153_v0, 0.0 }
  0x89   :  { %2948 = vmatmul.mubr.msk.f32.gmra.mrb[4].mxu0 %vm201_vm0, %v141_v2  ;;  %v128_v2 = vsel %vm123_vm1, %v111_v58, %v119_v51  ;;  %v106_v51 = vrot.slane %v3644_v48, 7 }
  0x8a   :  { %2950 = vmatprep.mubr.msk.f32.mxu0 %vm201_vm0, %v133_v3  ;;  %v112_v3 = vrot.slane %v3609_v37, 7 }
  0x8b   :  { %v147_v56 = vsel %vm123_vm1, %v98_v23, %v106_v51 }
  0x8d   :  { %2951 = vmatmul.mubr.msk.f32.gmra.mrb[6].mxu0 %vm201_vm0, %v125_v7  ;;  %v121_v7 = vrot.slane %v3633_v44, 7 }
  0x8e   :  { %2953 = vmatprep.mubr.msk.f32.mxu0 %vm201_vm0, %v168_v9  ;;  %v137_v9 = vsel %vm123_vm1, %v104_v1, %v112_v3  ;;  %v1635_v1 = vld [vmem:[#allocation5 + $0x80] sm:$0xff] }
  0x8f   :  { %v154_v11 = vsel %vm123_vm1, %v121_v7, %v97_v6  ;;  %v1638_v6 = vld [vmem:[#allocation5 + $0x98] sm:$0xff] }
  0x90   :  { %v184_v20 = vsel %vm156_vm2, %v154_v11, 0.0 }
  0x91   :  { %2954 = vmatmul.mubr.msk.f32.gmra.mrb[8].mxu0 %vm201_vm0, %v142_v14  ;;  %v129_v14 = vsel %vm123_vm1, %v112_v3, %v120_v61 }
  0x92   :  { %2956 = vmatprep.mubr.msk.f32.mxu0 %vm201_vm0, %v134_v19  ;;  %v113_v19 = vrot.slane %v3625_v42, 7 }
  0x95   :  { %2957 = vmatmul.mubr.msk.f32.gmra.mrb[10].mxu0 %vm201_vm0, %v126_v40  ;;  %v122_v40 = vrot.slane %v3656_v52, 7 }
  0x96   :  { %2959 = vmatprep.mubr.msk.f32.mxu0 %vm201_vm0, %v172_v47  ;;  %v138_v47 = vsel %vm123_vm1, %v105_v12, %v113_v19 }
  0x97   :  { %v155_v50 = vsel %vm123_vm1, %v122_v40, %v98_v23 }
  0x98   :  { %v188_v55 = vsel %vm156_vm2, %v155_v50, 0.0 }
  0x99   :  { %2960 = vmatmul.mubr.msk.f32.gmra.mrb[12].mxu0 %vm201_vm0, %v143_v53  ;;  %v130_v53 = vsel %vm123_vm1, %v113_v19, %v121_v7 }
  0x9a   :  { %2962 = vmatprep.mubr.msk.f32.mxu0 %vm201_vm0, %v135_v54  ;;  %v114_v54 = vrot.slane %v3646_v49, 7 }
  0x9c   :  { %v131_v58 = vsel %vm123_vm1, %v114_v54, %v122_v40 }
  0x9d   :  { %2963 = vmatmul.mubr.msk.f32.gmra.mrb[14].mxu0 %vm201_vm0, %v127_v57  ;;  %v139_v57 = vsel %vm123_vm1, %v106_v51, %v114_v54 }
  0x9e   :  { %2965 = vmatprep.mubr.msk.f32.mxu0 %vm201_vm0, %v176_v59  ;;  %v1017_v59 = vld [vmem:[#allocation5 + $0x70] sm:$0xff] }
  0x9f   :  { %v3254_v61 = vpack.c.bf16 %v1018_v60, %v1017_v59 }
  0xa1   :  { %2966 = vmatmul.mubr.msk.f32.gmra.mrb[16].mxu0 %vm201_vm0, %v144_v62  ;;  %3255 = vmatprep.subr.bf16.mxu1 %v3254_v61  ;;  %v1010_v62 = vld [vmem:[#allocation5 + $0x40] sm:$0xff] }
  0xa2   :  { %2968 = vmatprep.mubr.msk.f32.mxu0 %vm201_vm0, %v136_v63  ;;  %3257 = vmatpush3.bf16.msra.mxu1 %v3254_v61  ;;  %v1011_v63 = vld [vmem:[#allocation5 + $0x48] sm:$0xff] }
  0xa3   :  { %v3801_v0 = vpack.c.bf16 %v1011_v63, %v1010_v62 }
  0xa5   :  { %2969 = vmatmul.mubr.msk.f32.gmra.mrb[18].mxu0 %vm201_vm0, %v128_v2  ;;  %3259 = vmatprep.subr.bf16.mxu1 %v3801_v0  ;;  %v1636_v2 = vld [vmem:[#allocation5 + $0x88] sm:$0xff] }
  0xa6   :  { %2971 = vmatprep.mubr.msk.f32.mxu0 %vm201_vm0, %v180_v4  ;;  %v3266_v3 = vpack.c.bf16 %v1636_v2, %v1635_v1  ;;  %v1637_v4 = vld [vmem:[#allocation5 + $0x90] sm:$0xff] }
  0xa7   :  { %v3270_v7 = vpack.c.bf16 %v1638_v6, %v1637_v4 }
  0xa8   :  { %3267 = vmatprep.subr.bf16.mxu0 %v3266_v3 }
  0xa9   :  { %2972 = vmatmul.mubr.msk.f32.gmra.mrb[20].mxu0 %vm201_vm0, %v145_v8 }
  0xaa   :  { %2974 = vmatprep.mubr.msk.f32.mxu0 %vm201_vm0, %v137_v9  ;;  %3269 = vmatpush3.bf16.msra.mxu0 %v3266_v3 }
  0xab   :  { %3271 = vmatprep.subr.bf16.mxu0 %v3270_v7 }
  0xad   :  { %2975 = vmatmul.mubr.msk.f32.gmra.mrb[22].mxu0 %vm201_vm0, %v129_v14 }
  0xae   :  { %2977 = vmatprep.mubr.msk.f32.mxu0 %vm201_vm0, %v184_v20  ;;  %3273 = vmatpush3.bf16.msra.mxu0 %v3270_v7 }
  0xb1   :  { %2978 = vmatmul.mubr.msk.f32.gmra.mrb[24].mxu0 %vm201_vm0, %v146_v46 }
  0xb2   :  { %2980 = vmatprep.mubr.msk.f32.mxu0 %vm201_vm0, %v138_v47 }
  0xb5   :  { %2981 = vmatmul.mubr.msk.f32.gmra.mrb[26].mxu0 %vm201_vm0, %v130_v53 }
  0xb6   :  { %2983 = vmatprep.mubr.msk.f32.mxu0 %vm201_vm0, %v188_v55 }
  0xb9   :  { %2984 = vmatmul.mubr.msk.f32.gmra.mrb[28].mxu0 %vm201_vm0, %v147_v56 }
  0xba   :  { %2986 = vmatprep.mubr.msk.f32.mxu0 %vm201_vm0, %v139_v57 }
  0xbd   :  { %2987 = vmatmul.mubr.msk.f32.gmra.mrb[30].mxu0 %vm201_vm0, %v131_v58 }
  0xbe   :  { %3109 = vmatprep.mubr.msk.f32.mxu0 %vm201_vm0, %v3523_v5  ;;  %v3866_v5 = vld [vmem:[#allocation7] ss:$0 sm:$0xff] }
  0xc1   :  { %3110 = vmatmul.mubr.msk.f32.vlgmr.msra.gmra.mrb[32].mxu0 %vm201_vm0, %v3527_v10 }
  0xc2   :  { %3112 = vmatprep.mubr.msk.f32.mxu0 %vm201_vm0, %v3529_v13 }
  0xc5   :  { %3113 = vmatmul.mubr.msk.f32.gmra.mrb[34].mxu0 %vm201_vm0, %v3535_v15 }
  0xc6   :  { %3115 = vmatprep.mubr.msk.f32.mxu0 %vm201_vm0, %v3537_v16 }
  0xc9   :  { %3116 = vmatmul.mubr.msk.f32.gmra.mrb[36].mxu0 %vm201_vm0, %v3543_v17  ;;  %v1012_v17 = vld [vmem:[#allocation5 + $0x50] sm:$0xff] }
  0xca   :  { %3118 = vmatprep.mubr.msk.f32.mxu0 %vm201_vm0, %v3545_v18  ;;  %v1013_v18 = vld [vmem:[#allocation5 + $0x58] sm:$0xff] }
  0xcd   :  { %3119 = vmatmul.mubr.msk.f32.gmra.mrb[38].mxu0 %vm201_vm0, %v3551_v21 }
  0xce   :  { %3121 = vmatprep.mubr.msk.f32.mxu0 %vm201_vm0, %v3553_v22 }
  0xd1   :  { %3122 = vmatmul.mubr.msk.f32.gmra.mrb[40].mxu0 %vm201_vm0, %v3559_v24 }
  0xd2   :  { %3124 = vmatprep.mubr.msk.f32.mxu0 %vm201_vm0, %v3561_v25 }
  0xd5   :  { %3125 = vmatmul.mubr.msk.f32.gmra.mrb[42].mxu0 %vm201_vm0, %v3567_v26 }
  0xd6   :  { %3127 = vmatprep.mubr.msk.f32.mxu0 %vm201_vm0, %v3569_v27 }
  0xd9   :  { %3128 = vmatmul.mubr.msk.f32.gmra.mrb[44].mxu0 %vm201_vm0, %v3575_v28  ;;  %v3262_v28 = vpack.c.bf16 %v1013_v18, %v1012_v17 }
  0xda   :  { %3130 = vmatprep.mubr.msk.f32.mxu0 %vm201_vm0, %v3577_v29 }
  0xdd   :  { %3131 = vmatmul.mubr.msk.f32.gmra.mrb[46].mxu0 %vm201_vm0, %v3583_v30 }
  0xde   :  { %3133 = vmatprep.mubr.msk.f32.mxu0 %vm201_vm0, %v3585_v31 }
  0xe1   :  { %3134 = vmatmul.mubr.msk.f32.gmra.mrb[48].mxu0 %vm201_vm0, %v3591_v32 }
  0xe2   :  { %3136 = vmatprep.mubr.msk.f32.mxu0 %vm201_vm0, %v3593_v33 }
  0xe5   :  { %3137 = vmatmul.mubr.msk.f32.gmra.mrb[50].mxu0 %vm201_vm0, %v3599_v34 }
  0xe6   :  { %3139 = vmatprep.mubr.msk.f32.mxu0 %vm201_vm0, %v3601_v35 }
  0xe9   :  { %3140 = vmatmul.mubr.msk.f32.gmra.mrb[52].mxu0 %vm201_vm0, %v3607_v36 }
  0xea   :  { %3142 = vmatprep.mubr.msk.f32.mxu0 %vm201_vm0, %v3609_v37 }
  0xed   :  { %3143 = vmatmul.mubr.msk.f32.gmra.mrb[54].mxu0 %vm201_vm0, %v3615_v38 }
  0xee   :  { %3145 = vmatprep.mubr.msk.f32.mxu0 %vm201_vm0, %v3617_v39 }
  0xf1   :  { %3146 = vmatmul.mubr.msk.f32.gmra.mrb[56].mxu0 %vm201_vm0, %v3623_v41 }
  0xf2   :  { %3148 = vmatprep.mubr.msk.f32.mxu0 %vm201_vm0, %v3625_v42 }
  0xf5   :  { %3149 = vmatmul.mubr.msk.f32.gmra.mrb[58].mxu0 %vm201_vm0, %v3633_v44 }
  0xf6   :  { %3151 = vmatprep.mubr.msk.f32.mxu0 %vm201_vm0, %v3635_v45 }
  0xf9   :  { %3152 = vmatmul.mubr.msk.f32.gmra.mrb[60].mxu0 %vm201_vm0, %v3644_v48 }
  0xfa   :  { %3154 = vmatprep.mubr.msk.f32.mxu0 %vm201_vm0, %v3646_v49 }
  0xfd   :  { %3155 = vmatmul.mubr.msk.f32.gmra.mrb[62].mxu0 %vm201_vm0, %v3656_v52 }
 0x154   :  { %v2943_v10 = vpop.f32.mrb[0].mxu0 }
 0x155   :  { %v850_v13 = vadd.f32 %v2943_v10, %v3866_v5  ;;  %v685_v15 = vpop.f32.mrb[1].mxu0 }
 0x156   :  { %v849_v16 = vadd.f32 %v3866_v5, %v685_v15 }
 0x157   :  { %v882_v21 = vmax.f32 %v850_v13, 0.0 }
 0x158   :  { %v881_v22 = vmax.f32 %v849_v16, 0.0  ;;  %v2946_v24 = vpop.f32.mrb[2].mxu0 }
 0x159   :  { %v921_v25 = vrot.slane %v882_v21, 7  ;;  %v852_v26 = vadd.f32 %v2946_v24, %v3866_v5  ;;  %v695_v27 = vpop.f32.mrb[3].mxu0 }
 0x15a   :  { %v913_v29 = vrot.slane %v881_v22, 7  ;;  %v851_v30 = vadd.f32 %v3866_v5, %v695_v27  ;;  %2997 = vmatprep.mubr.msk.f32.mxu1 %vm201_vm0, %v881_v22 }
 0x15b   :  { %v884_v31 = vmax.f32 %v852_v26, 0.0  ;;  %2998 = vmatmul.mubr.msk.f32.vlgmr.msra.gmra.mrb[0].mxu1 %vm201_vm0, %v882_v21 }
 0x15c   :  { %v3876_v32 = vsel %vm123_vm1, %v913_v29, %v921_v25  ;;  %v883_v33 = vmax.f32 %v851_v30, 0.0  ;;  %v2949_v34 = vpop.f32.mrb[4].mxu0  ;;  %3261 = vmatpush3.bf16.msra.mxu1 %v3801_v0 }
 0x15d   :  { %v937_v35 = vrot.slane %v884_v31, 7  ;;  %v854_v36 = vadd.f32 %v2949_v34, %v3866_v5  ;;  %v705_v37 = vpop.f32.mrb[5].mxu0  ;;  %3263 = vmatprep.subr.bf16.mxu1 %v3262_v28 }
 0x15e   :  { %v929_v38 = vrot.slane %v883_v33, 7  ;;  %v853_v39 = vadd.f32 %v3866_v5, %v705_v37  ;;  %3000 = vmatprep.mubr.msk.f32.mxu1 %vm201_vm0, %v883_v33 }
 0x15f   :  { %v886_v41 = vmax.f32 %v854_v36, 0.0  ;;  %3001 = vmatmul.mubr.msk.f32.gmra.mrb[2].mxu1 %vm201_vm0, %v884_v31  ;;  %v3885_v42 = vsel %vm123_vm1, %v937_v35, %v913_v29 }
 0x160   :  { %v885_v44 = vmax.f32 %v853_v39, 0.0  ;;  %v2952_v45 = vpop.f32.mrb[6].mxu0  ;;  %3265 = vmatpush3.bf16.msra.mxu1 %v3262_v28  ;;  %v3889_v48 = vsel %vm123_vm1, %v921_v25, %v929_v38  ;;  %v3893_v49 = vsel %vm123_vm1, %v929_v38, %v937_v35 }
 0x161   :  { %v922_v52 = vrot.slane %v886_v41, 7  ;;  %v856_v8 = vadd.f32 %v2952_v45, %v3866_v5  ;;  %v715_v9 = vpop.f32.mrb[7].mxu0  ;;  %3274 = vmatprep.subr.bf16.mxu1 %v3456_v43 }
 0x162   :  { %v914_v11 = vrot.slane %v885_v44, 7  ;;  %v855_v12 = vadd.f32 %v3866_v5, %v715_v9  ;;  %3003 = vmatprep.mubr.msk.f32.mxu1 %vm201_vm0, %v885_v44 }
 0x163   :  { %v888_v14 = vmax.f32 %v856_v8, 0.0  ;;  %3004 = vmatmul.mubr.msk.f32.gmra.mrb[4].mxu1 %vm201_vm0, %v886_v41 }
 0x164   :  { %v887_v19 = vmax.f32 %v855_v12, 0.0  ;;  %v2955_v20 = vpop.f32.mrb[8].mxu0  ;;  %v3901_v23 = vsel %vm123_vm1, %v914_v11, %v922_v52 }
 0x165   :  { %v938_v40 = vrot.slane %v888_v14, 7  ;;  %v858_v46 = vadd.f32 %v2955_v20, %v3866_v5  ;;  %v725_v47 = vpop.f32.mrb[9].mxu0 }
 0x166   :  { %v930_v50 = vrot.slane %v887_v19, 7  ;;  %v857_v51 = vadd.f32 %v3866_v5, %v725_v47  ;;  %3006 = vmatprep.mubr.msk.f32.mxu1 %vm201_vm0, %v887_v19 }
 0x167   :  { %v890_v53 = vmax.f32 %v858_v46, 0.0  ;;  %3007 = vmatmul.mubr.msk.f32.gmra.mrb[6].mxu1 %vm201_vm0, %v888_v14  ;;  %v3909_v54 = vsel %vm123_vm1, %v938_v40, %v914_v11 }
 0x168   :  { %v889_v55 = vmax.f32 %v857_v51, 0.0  ;;  %v2958_v56 = vpop.f32.mrb[10].mxu0  ;;  %v3913_v57 = vsel %vm123_vm1, %v922_v52, %v930_v50  ;;  %v3917_v58 = vsel %vm123_vm1, %v930_v50, %v938_v40 }
 0x169   :  { %v923_v59 = vrot.slane %v890_v53, 7  ;;  %v860_v60 = vadd.f32 %v2958_v56, %v3866_v5  ;;  %v735_v61 = vpop.f32.mrb[11].mxu0 }
 0x16a   :  { %v915_v62 = vrot.slane %v889_v55, 7  ;;  %v859_v63 = vadd.f32 %v3866_v5, %v735_v61  ;;  %3009 = vmatprep.mubr.msk.f32.mxu1 %vm201_vm0, %v889_v55 }
 0x16b   :  { %v892_v0 = vmax.f32 %v860_v60, 0.0  ;;  %3010 = vmatmul.mubr.msk.f32.gmra.mrb[8].mxu1 %vm201_vm0, %v890_v53 }
 0x16c   :  { %v891_v1 = vmax.f32 %v859_v63, 0.0  ;;  %v2961_v2 = vpop.f32.mrb[12].mxu0  ;;  %v3925_v3 = vsel %vm123_vm1, %v915_v62, %v923_v59 }
 0x16d   :  { %v939_v4 = vrot.slane %v892_v0, 7  ;;  %v862_v6 = vadd.f32 %v2961_v2, %v3866_v5  ;;  %v745_v7 = vpop.f32.mrb[13].mxu0 }
 0x16e   :  { %v931_v10 = vrot.slane %v891_v1, 7  ;;  %v861_v13 = vadd.f32 %v3866_v5, %v745_v7  ;;  %3012 = vmatprep.mubr.msk.f32.mxu1 %vm201_vm0, %v891_v1 }
 0x16f   :  { %v894_v15 = vmax.f32 %v862_v6, 0.0  ;;  %3013 = vmatmul.mubr.msk.f32.gmra.mrb[10].mxu1 %vm201_vm0, %v892_v0  ;;  %v3933_v16 = vsel %vm123_vm1, %v939_v4, %v915_v62 }
 0x170   :  { %v893_v17 = vmax.f32 %v861_v13, 0.0  ;;  %v2964_v18 = vpop.f32.mrb[14].mxu0  ;;  %v3937_v21 = vsel %vm123_vm1, %v923_v59, %v931_v10  ;;  %v3941_v22 = vsel %vm123_vm1, %v931_v10, %v939_v4 }
 0x171   :  { %v924_v24 = vrot.slane %v894_v15, 7  ;;  %v864_v25 = vadd.f32 %v2964_v18, %v3866_v5  ;;  %v755_v26 = vpop.f32.mrb[15].mxu0 }
 0x172   :  { %v916_v27 = vrot.slane %v893_v17, 7  ;;  %v863_v28 = vadd.f32 %v3866_v5, %v755_v26  ;;  %3015 = vmatprep.mubr.msk.f32.mxu1 %vm201_vm0, %v893_v17 }
 0x173   :  { %v896_v29 = vmax.f32 %v864_v25, 0.0  ;;  %3016 = vmatmul.mubr.msk.f32.gmra.mrb[12].mxu1 %vm201_vm0, %v894_v15 }
 0x174   :  { %v895_v30 = vmax.f32 %v863_v28, 0.0  ;;  %v2967_v31 = vpop.f32.mrb[16].mxu0  ;;  %v3949_v33 = vsel %vm123_vm1, %v916_v27, %v924_v24 }
 0x175   :  { %v940_v34 = vrot.slane %v896_v29, 7  ;;  %v866_v35 = vadd.f32 %v2967_v31, %v3866_v5  ;;  %v765_v36 = vpop.f32.mrb[17].mxu0 }
 0x176   :  { %v932_v37 = vrot.slane %v895_v30, 7  ;;  %v865_v38 = vadd.f32 %v3866_v5, %v765_v36  ;;  %3018 = vmatprep.mubr.msk.f32.mxu1 %vm201_vm0, %v895_v30 }
 0x177   :  { %v898_v39 = vmax.f32 %v866_v35, 0.0  ;;  %3019 = vmatmul.mubr.msk.f32.gmra.mrb[14].mxu1 %vm201_vm0, %v896_v29  ;;  %v3957_v41 = vsel %vm123_vm1, %v940_v34, %v916_v27 }
 0x178   :  { %v897_v44 = vmax.f32 %v865_v38, 0.0  ;;  %v2970_v45 = vpop.f32.mrb[18].mxu0  ;;  %v3961_v52 = vsel %vm123_vm1, %v924_v24, %v932_v37  ;;  %v3965_v8 = vsel %vm123_vm1, %v932_v37, %v940_v34 }
 0x179   :  { %v925_v9 = vrot.slane %v898_v39, 7  ;;  %v868_v11 = vadd.f32 %v2970_v45, %v3866_v5  ;;  %v775_v12 = vpop.f32.mrb[19].mxu0 }
 0x17a   :  { %v917_v14 = vrot.slane %v897_v44, 7  ;;  %v867_v19 = vadd.f32 %v3866_v5, %v775_v12  ;;  %3021 = vmatprep.mubr.msk.f32.mxu1 %vm201_vm0, %v897_v44 }
 0x17b   :  { %v900_v20 = vmax.f32 %v868_v11, 0.0  ;;  %3022 = vmatmul.mubr.msk.f32.gmra.mrb[16].mxu1 %vm201_vm0, %v898_v39 }
 0x17c   :  { %v899_v40 = vmax.f32 %v867_v19, 0.0  ;;  %v2973_v46 = vpop.f32.mrb[20].mxu0  ;;  %v3973_v47 = vsel %vm123_vm1, %v917_v14, %v925_v9 }
 0x17d   :  { %v941_v50 = vrot.slane %v900_v20, 7  ;;  %v870_v51 = vadd.f32 %v2973_v46, %v3866_v5  ;;  %v785_v53 = vpop.f32.mrb[21].mxu0 }
 0x17e   :  { %v933_v55 = vrot.slane %v899_v40, 7  ;;  %v869_v56 = vadd.f32 %v3866_v5, %v785_v53  ;;  %3024 = vmatprep.mubr.msk.f32.mxu1 %vm201_vm0, %v899_v40 }
 0x17f   :  { %v902_v59 = vmax.f32 %v870_v51, 0.0  ;;  %3025 = vmatmul.mubr.msk.f32.gmra.mrb[18].mxu1 %vm201_vm0, %v900_v20  ;;  %v3981_v60 = vsel %vm123_vm1, %v941_v50, %v917_v14 }
 0x180   :  { %v901_v61 = vmax.f32 %v869_v56, 0.0  ;;  %v2976_v62 = vpop.f32.mrb[22].mxu0  ;;  %v3985_v63 = vsel %vm123_vm1, %v925_v9, %v933_v55  ;;  %v3989_v0 = vsel %vm123_vm1, %v933_v55, %v941_v50 }
 0x181   :  { %v926_v1 = vrot.slane %v902_v59, 7  ;;  %v872_v2 = vadd.f32 %v2976_v62, %v3866_v5  ;;  %v795_v4 = vpop.f32.mrb[23].mxu0 }
 0x182   :  { %v918_v6 = vrot.slane %v901_v61, 7  ;;  %v871_v7 = vadd.f32 %v3866_v5, %v795_v4  ;;  %3027 = vmatprep.mubr.msk.f32.mxu1 %vm201_vm0, %v901_v61 }
 0x183   :  { %v904_v10 = vmax.f32 %v872_v2, 0.0  ;;  %3028 = vmatmul.mubr.msk.f32.gmra.mrb[20].mxu1 %vm201_vm0, %v902_v59 }
 0x184   :  { %v903_v13 = vmax.f32 %v871_v7, 0.0  ;;  %v2979_v15 = vpop.f32.mrb[24].mxu0  ;;  %v3997_v17 = vsel %vm123_vm1, %v918_v6, %v926_v1 }
 0x185   :  { %v942_v18 = vrot.slane %v904_v10, 7  ;;  %v874_v24 = vadd.f32 %v2979_v15, %v3866_v5  ;;  %v805_v25 = vpop.f32.mrb[25].mxu0 }
 0x186   :  { %v934_v26 = vrot.slane %v903_v13, 7  ;;  %v873_v27 = vadd.f32 %v3866_v5, %v805_v25  ;;  %3030 = vmatprep.mubr.msk.f32.mxu1 %vm201_vm0, %v903_v13 }
 0x187   :  { %v906_v28 = vmax.f32 %v874_v24, 0.0  ;;  %3031 = vmatmul.mubr.msk.f32.gmra.mrb[22].mxu1 %vm201_vm0, %v904_v10  ;;  %v4005_v29 = vsel %vm123_vm1, %v942_v18, %v918_v6 }
 0x188   :  { %v905_v30 = vmax.f32 %v873_v27, 0.0  ;;  %v2982_v31 = vpop.f32.mrb[26].mxu0  ;;  %v4009_v34 = vsel %vm123_vm1, %v926_v1, %v934_v26  ;;  %v4013_v35 = vsel %vm123_vm1, %v934_v26, %v942_v18  ;;  %v977_v18 = vsel %vm156_vm2, %v3885_v42, 0.0 }
 0x189   :  { %v927_v36 = vrot.slane %v906_v28, 7  ;;  %v876_v37 = vadd.f32 %v2982_v31, %v3866_v5  ;;  %v815_v38 = vpop.f32.mrb[27].mxu0  ;;  %v981_v42 = vsel %vm156_vm2, %v3909_v54, 0.0 }
 0x18a   :  { %v919_v39 = vrot.slane %v905_v30, 7  ;;  %v875_v44 = vadd.f32 %v3866_v5, %v815_v38  ;;  %3033 = vmatprep.mubr.msk.f32.mxu1 %vm201_vm0, %v905_v30 }
 0x18b   :  { %v908_v45 = vmax.f32 %v876_v37, 0.0  ;;  %3034 = vmatmul.mubr.msk.f32.gmra.mrb[24].mxu1 %vm201_vm0, %v906_v28 }
 0x18c   :  { %v907_v9 = vmax.f32 %v875_v44, 0.0  ;;  %v2985_v11 = vpop.f32.mrb[28].mxu0  ;;  %v4021_v12 = vsel %vm123_vm1, %v919_v39, %v927_v36 }
 0x18d   :  { %v943_v14 = vrot.slane %v908_v45, 7  ;;  %v878_v19 = vadd.f32 %v2985_v11, %v3866_v5  ;;  %v825_v20 = vpop.f32.mrb[29].mxu0 }
 0x18e   :  { %v935_v40 = vrot.slane %v907_v9, 7  ;;  %v877_v46 = vadd.f32 %v3866_v5, %v825_v20  ;;  %3036 = vmatprep.mubr.msk.f32.mxu1 %vm201_vm0, %v907_v9  ;;  %v1870_v9 = vld [vmem:[#allocation5 + $0xd8] sm:$0xff] }
 0x18f   :  { %v910_v50 = vmax.f32 %v878_v19, 0.0  ;;  %3037 = vmatmul.mubr.msk.f32.gmra.mrb[26].mxu1 %vm201_vm0, %v908_v45  ;;  %v975_v51 = vsel %vm123_vm1, %v943_v14, %v919_v39  ;;  %v1869_v45 = vld [vmem:[#allocation5 + $0xd0] sm:$0xff] }
 0x190   :  { %v909_v53 = vmax.f32 %v877_v46, 0.0  ;;  %v2988_v55 = vpop.f32.mrb[30].mxu0  ;;  %v959_v56 = vsel %vm123_vm1, %v927_v36, %v935_v40  ;;  %v951_v59 = vsel %vm123_vm1, %v935_v40, %v943_v14  ;;  %v1001_v54 = vsel %vm156_vm2, %v975_v51, 0.0 }
 0x191   :  { %v928_v61 = vrot.slane %v910_v50, 7  ;;  %v880_v62 = vadd.f32 %v2988_v55, %v3866_v5  ;;  %v835_v1 = vpop.f32.mrb[31].mxu0 }
 0x192   :  { %v920_v2 = vrot.slane %v909_v53, 7  ;;  %v879_v4 = vadd.f32 %v3866_v5, %v835_v1  ;;  %3039 = vmatprep.mubr.msk.f32.mxu1 %vm201_vm0, %v909_v53 }
 0x193   :  { %v912_v6 = vmax.f32 %v880_v62, 0.0  ;;  %3040 = vmatmul.mubr.msk.f32.gmra.mrb[28].mxu1 %vm201_vm0, %v910_v50 }
 0x194   :  { %v911_v7 = vmax.f32 %v879_v4, 0.0  ;;  %v968_v10 = vsel %vm123_vm1, %v920_v2, %v928_v61 }
 0x195   :  { %v944_v13 = vrot.slane %v912_v6, 7 }
 0x196   :  { %v936_v15 = vrot.slane %v911_v7, 7  ;;  %3042 = vmatprep.mubr.msk.f32.mxu1 %vm201_vm0, %v911_v7 }
 0x197   :  { %3043 = vmatmul.mubr.msk.f32.gmra.mrb[30].mxu1 %vm201_vm0, %v912_v6  ;;  %v976_v5 = vsel %vm123_vm1, %v944_v13, %v920_v2 }
 0x198   :  { %3053 = vmatprep.mubr.msk.f32.mxu1 %vm201_vm0, %v977_v18  ;;  %v960_v24 = vsel %vm123_vm1, %v928_v61, %v936_v15  ;;  %v952_v25 = vsel %vm123_vm1, %v936_v15, %v944_v13  ;;  %v3458_v61 = vmov 0.0  }
 0x19b   :  { %3054 = vmatmul.mubr.msk.f32.vlgmr.msra.gmra.mrb[32].mxu1 %vm201_vm0, %v3876_v32  ;;  %v985_v32 = vsel %vm156_vm2, %v3933_v16, 0.0 }
 0x19c   :  { %3056 = vmatprep.mubr.msk.f32.mxu1 %vm201_vm0, %v3889_v48  ;;  %v989_v48 = vsel %vm156_vm2, %v3957_v41, 0.0  ;;  %v1867_v41 = vld [vmem:[#allocation5 + $0xc0] sm:$0xff] }
 0x19f   :  { %3057 = vmatmul.mubr.msk.f32.gmra.mrb[34].mxu1 %vm201_vm0, %v3893_v49  ;;  %v993_v49 = vsel %vm156_vm2, %v3981_v60, 0.0 }
 0x1a0   :  { %3059 = vmatprep.mubr.msk.f32.mxu1 %vm201_vm0, %v981_v42 }
 0x1a3   :  { %3060 = vmatmul.mubr.msk.f32.gmra.mrb[36].mxu1 %vm201_vm0, %v3901_v23  ;;  %v997_v23 = vsel %vm156_vm2, %v4005_v29, 0.0 }
 0x1a4   :  { %3062 = vmatprep.mubr.msk.f32.mxu1 %vm201_vm0, %v3913_v57  ;;  %v1005_v57 = vsel %vm156_vm2, %v976_v5, 0.0 }
 0x1a7   :  { %3063 = vmatmul.mubr.msk.f32.gmra.mrb[38].mxu1 %vm201_vm0, %v3917_v58  ;;  %v3111_v58 = vpop.f32.mrb[32].mxu0 }
 0x1a8   :  { %3065 = vmatprep.mubr.msk.f32.mxu1 %vm201_vm0, %v985_v32 }
 0x1ab   :  { %3066 = vmatmul.mubr.msk.f32.gmra.mrb[40].mxu1 %vm201_vm0, %v3925_v3  ;;  %v1710_v3 = vpop.f32.mrb[33].mxu0 }
 0x1ac   :  { %3068 = vmatprep.mubr.msk.f32.mxu1 %vm201_vm0, %v3937_v21  ;;  %v4120_v16 = vpop.f32.mrb[34].mxu0 }
 0x1ad   :  { %v1718_v21 = vpop.f32.mrb[35].mxu0 }
 0x1af   :  { %3069 = vmatmul.mubr.msk.f32.gmra.mrb[42].mxu1 %vm201_vm0, %v3941_v22  ;;  %v3117_v22 = vpop.f32.mrb[36].mxu0 }
 0x1b0   :  { %3071 = vmatprep.mubr.msk.f32.mxu1 %vm201_vm0, %v989_v48 }
 0x1b3   :  { %3072 = vmatmul.mubr.msk.f32.gmra.mrb[44].mxu1 %vm201_vm0, %v3949_v33  ;;  %v1727_v33 = vpop.f32.mrb[37].mxu0 }
 0x1b4   :  { %3074 = vmatprep.mubr.msk.f32.mxu1 %vm201_vm0, %v3961_v52  ;;  %v1868_v52 = vld [vmem:[#allocation5 + $0xc8] sm:$0xff] }
 0x1b7   :  { %3075 = vmatmul.mubr.msk.f32.gmra.mrb[46].mxu1 %vm201_vm0, %v3965_v8  ;;  %v4122_v8 = vpop.f32.mrb[38].mxu0 }
 0x1b8   :  { %3077 = vmatprep.mubr.msk.f32.mxu1 %vm201_vm0, %v993_v49  ;;  %v1735_v60 = vpop.f32.mrb[39].mxu0 }
 0x1bb   :  { %3078 = vmatmul.mubr.msk.f32.gmra.mrb[48].mxu1 %vm201_vm0, %v3973_v47  ;;  %v4125_v47 = vpack.c.bf16 %v1868_v52, %v1867_v41 }
 0x1bc   :  { %3080 = vmatprep.mubr.msk.f32.mxu1 %vm201_vm0, %v3985_v63  ;;  %v3123_v63 = vpop.f32.mrb[40].mxu0 }
 0x1bd   :  { %3276 = vmatpush3.bf16.msra.mxu1 %v4125_v47 }
 0x1be   :  { %3277 = vmatprep.subr.bf16.mxu1 %v3456_v43 }
 0x1bf   :  { %3081 = vmatmul.mubr.msk.f32.gmra.mrb[50].mxu1 %vm201_vm0, %v3989_v0  ;;  %v1744_v0 = vpop.f32.mrb[41].mxu0 }
 0x1c0   :  { %3083 = vmatprep.mubr.msk.f32.mxu1 %vm201_vm0, %v997_v23 }
 0x1c3   :  { %3084 = vmatmul.mubr.msk.f32.gmra.mrb[52].mxu1 %vm201_vm0, %v3997_v17  ;;  %v4129_v17 = vpop.f32.mrb[42].mxu0 }
 0x1c4   :  { %3086 = vmatprep.mubr.msk.f32.mxu1 %vm201_vm0, %v4009_v34  ;;  %v1752_v26 = vpop.f32.mrb[43].mxu0 }
 0x1c5   :  { %v3129_v27 = vpop.f32.mrb[44].mxu0 }
 0x1c6   :  { %v1761_v28 = vpop.f32.mrb[45].mxu0  ;;  %v4157_v27 = vld [vmem:[#allocation7 + $0x1] ss:$0 sm:$0xff] }
 0x1c7   :  { %3087 = vmatmul.mubr.msk.f32.gmra.mrb[54].mxu1 %vm201_vm0, %v4013_v35  ;;  %v4131_v29 = vpop.f32.mrb[46].mxu0  ;;  %v4159_v28 = vld [vmem:[#allocation7 + $0x2] ss:$0 sm:$0xff] }
 0x1c8   :  { %3089 = vmatprep.mubr.msk.f32.mxu1 %vm201_vm0, %v1001_v54  ;;  %v1769_v30 = vpop.f32.mrb[47].mxu0 }
 0x1c9   :  { %v3135_v31 = vpop.f32.mrb[48].mxu0 }
 0x1ca   :  { %v1778_v34 = vpop.f32.mrb[49].mxu0 }
 0x1cb   :  { %3090 = vmatmul.mubr.msk.f32.gmra.mrb[56].mxu1 %vm201_vm0, %v4021_v12  ;;  %v4133_v35 = vpop.f32.mrb[50].mxu0  ;;  %v4137_v12 = vpack.c.bf16 %v1870_v9, %v1869_v45 }
 0x1cc   :  { %3092 = vmatprep.mubr.msk.f32.mxu1 %vm201_vm0, %v959_v56  ;;  %v1786_v36 = vpop.f32.mrb[51].mxu0 }
 0x1cd   :  { %v3141_v37 = vpop.f32.mrb[52].mxu0  ;;  %3279 = vmatpush3.bf16.msra.mxu1 %v4137_v12  ;;  %v1723_v36 = vadd.f32 %v4120_v16, %v4159_v28 }
 0x1ce   :  { %v1795_v38 = vpop.f32.mrb[53].mxu0  ;;  %3280 = vmatprep.subr.bf16.mxu1 %v3456_v43 }
 0x1cf   :  { %3093 = vmatmul.mubr.msk.f32.gmra.mrb[58].mxu1 %vm201_vm0, %v951_v59  ;;  %v4135_v39 = vpop.f32.mrb[54].mxu0 }
 0x1d0   :  { %3095 = vmatprep.mubr.msk.f32.mxu1 %vm201_vm0, %v1005_v57  ;;  %v1803_v44 = vpop.f32.mrb[55].mxu0 }
 0x1d1   :  { %v3147_v11 = vpop.f32.mrb[56].mxu0 }
 0x1d2   :  { %v1812_v14 = vpop.f32.mrb[57].mxu0 }
 0x1d3   :  { %3096 = vmatmul.mubr.msk.f32.gmra.mrb[60].mxu1 %vm201_vm0, %v968_v10  ;;  %v4141_v19 = vpop.f32.mrb[58].mxu0 }
 0x1d4   :  { %3098 = vmatprep.mubr.msk.f32.mxu1 %vm201_vm0, %v960_v24  ;;  %v1820_v20 = vpop.f32.mrb[59].mxu0 }
 0x1d5   :  { %v3153_v40 = vpop.f32.mrb[60].mxu0 }
 0x1d6   :  { %v1829_v46 = vpop.f32.mrb[61].mxu0  ;;  %v1740_v40 = vadd.f32 %v4122_v8, %v4159_v28 }
 0x1d7   :  { %3099 = vmatmul.mubr.msk.f32.gmra.mrb[62].mxu1 %vm201_vm0, %v952_v25  ;;  %v4143_v50 = vpop.f32.mrb[62].mxu0 }
 0x1d8   :  { %v1837_v53 = vpop.f32.mrb[63].mxu0  ;;  %3165 = vmatprep.mubr.msk.f32.mxu1 %vm3457_vm3, %v3458_v61 }
 0x22e   :  { %v2999_v51 = vpop.f32.mrb[0].mxu1 }
 0x22f   :  { %v1181_v55 = vpop.f32.mrb[1].mxu1 }
 0x232   :  { %v3002_v56 = vpop.f32.mrb[2].mxu1 }
 0x233   :  { %v1189_v59 = vpop.f32.mrb[3].mxu1 }
 0x236   :  { %v3005_v62 = vpop.f32.mrb[4].mxu1 }
 0x237   :  { %v1198_v1 = vpop.f32.mrb[5].mxu1 }
 0x23a   :  { %v3008_v2 = vpop.f32.mrb[6].mxu1 }
 0x23b   :  { %v1206_v4 = vpop.f32.mrb[7].mxu1 }
 0x23e   :  { %v3011_v6 = vpop.f32.mrb[8].mxu1 }
 0x23f   :  { %v1215_v7 = vpop.f32.mrb[9].mxu1 }
 0x242   :  { %v3014_v10 = vpop.f32.mrb[10].mxu1 }
 0x243   :  { %v1223_v13 = vpop.f32.mrb[11].mxu1 }
 0x246   :  { %v3017_v15 = vpop.f32.mrb[12].mxu1 }
 0x247   :  { %v1232_v18 = vpop.f32.mrb[13].mxu1 }
 0x24a   :  { %v4147_v5 = vpop.f32.mrb[14].mxu1 }
 0x24b   :  { %v1240_v24 = vpop.f32.mrb[15].mxu1 }
 0x24e   :  { %v3023_v25 = vpop.f32.mrb[16].mxu1 }
 0x24f   :  { %v1249_v42 = vpop.f32.mrb[17].mxu1 }
 0x252   :  { %v4149_v32 = vpop.f32.mrb[18].mxu1 }
 0x253   :  { %v1257_v48 = vpop.f32.mrb[19].mxu1 }
 0x256   :  { %v3029_v49 = vpop.f32.mrb[20].mxu1 }
 0x257   :  { %v1266_v23 = vpop.f32.mrb[21].mxu1 }
 0x25a   :  { %v4151_v54 = vpop.f32.mrb[22].mxu1 }
 0x25b   :  { %v1274_v57 = vpop.f32.mrb[23].mxu1 }
 0x25e   :  { %v3035_v58 = vpop.f32.mrb[24].mxu1 }
 0x25f   :  { %v1283_v3 = vpop.f32.mrb[25].mxu1 }
 0x262   :  { %v4153_v21 = vpop.f32.mrb[26].mxu1 }
 0x263   :  { %v1291_v22 = vpop.f32.mrb[27].mxu1 }
 0x264   :  { %v1774_v22 = vadd.f32 %v4131_v29, %v4159_v28  ;;  %v1791_v29 = vadd.f32 %v4133_v35, %v4159_v28  ;;  %v1808_v35 = vadd.f32 %v4135_v39, %v4159_v28  ;;  %v1825_v39 = vadd.f32 %v4141_v19, %v4159_v28 }
 0x266   :  { %v3041_v33 = vpop.f32.mrb[28].mxu1 }
 0x267   :  { %v1300_v41 = vpop.f32.mrb[29].mxu1 }
 0x26a   :  { %v4155_v52 = vpop.f32.mrb[30].mxu1 }
 0x26b   :  { %v1308_v60 = vpop.f32.mrb[31].mxu1 }
 0x26e   :  { %v3055_v63 = vpop.f32.mrb[32].mxu1 }
 0x26f   :  { %v1478_v0 = vpop.f32.mrb[33].mxu1 }
 0x272   :  { %v3058_v26 = vpop.f32.mrb[34].mxu1 }
 0x273   :  { %v1491_v30 = vadd.f32 %v3058_v26, %v3002_v56  ;;  %v1486_v31 = vpop.f32.mrb[35].mxu1 }
 0x275   :  { %v1618_v34 = vadd.f32 %v4157_v27, %v1491_v30 }
 0x276   :  { %v3061_v37 = vpop.f32.mrb[36].mxu1 }
 0x277   :  { %v1626_v38 = vmax.f32 %v1618_v34, 0.0  ;;  %v1495_v44 = vpop.f32.mrb[37].mxu1 }
 0x279   :  { %v1845_v45 = vadd.f32 %v1723_v36, %v1626_v38 }
 0x27a   :  { %v3064_v9 = vpop.f32.mrb[38].mxu1 }
 0x27b   :  { %v1508_v11 = vadd.f32 %v3064_v9, %v3008_v2  ;;  %v1503_v14 = vpop.f32.mrb[39].mxu1  ;;  %v1853_v55 = vmax.f32 %v1845_v45, 0.0  ;;  %v1757_v2 = vadd.f32 %v4129_v17, %v4159_v28 }
 0x27d   :  { %v1619_v20 = vadd.f32 %v4157_v27, %v1508_v11  ;;  %v1879_v4 = vrot.slane %v1853_v55, 7  ;;  %v1972_v6 = vrot.slane %v1853_v55, 5  ;;  %v2135_v7 = vrot.slane %v1853_v55, 3 }
 0x27e   :  { %v3067_v46 = vpop.f32.mrb[40].mxu1 }
 0x27f   :  { %v1627_v51 = vmax.f32 %v1619_v20, 0.0  ;;  %v1512_v53 = vpop.f32.mrb[41].mxu1 }
 0x281   :  { %v1846_v56 = vadd.f32 %v1740_v40, %v1627_v51 }
 0x282   :  { %v3070_v59 = vpop.f32.mrb[42].mxu1 }
 0x283   :  { %v1854_v62 = vmax.f32 %v1846_v56, 0.0  ;;  %v1525_v16 = vadd.f32 %v3070_v59, %v3014_v10  ;;  %v1520_v1 = vpop.f32.mrb[43].mxu1 }
 0x285   :  { %v1880_v13 = vrot.slane %v1854_v62, 6  ;;  %v1973_v15 = vrot.slane %v1854_v62, 4  ;;  %v2136_v18 = vrot.slane %v1854_v62, 2  ;;  %v1620_v8 = vadd.f32 %v4157_v27, %v1525_v16 }
 0x286   :  { %v3073_v24 = vpop.f32.mrb[44].mxu1 }
 0x287   :  { %v1882_v25 = vsel %vm1881_vm4, %v1880_v13, %v1879_v4  ;;  %v1974_v42 = vsel %vm1881_vm4, %v1973_v15, %v1972_v6  ;;  %v1628_v48 = vmax.f32 %v1620_v8, 0.0  ;;  %v1529_v49 = vpop.f32.mrb[45].mxu1  ;;  %v2137_v10 = vsel %vm1881_vm4, %v2136_v18, %v2135_v7 }
 0x289   :  { %v1847_v23 = vadd.f32 %v1757_v2, %v1628_v48 }
 0x28a   :  { %v3076_v57 = vpop.f32.mrb[46].mxu1 }
 0x28b   :  { %v1855_v58 = vmax.f32 %v1847_v23, 0.0  ;;  %v1542_v3 = vadd.f32 %v3076_v57, %v4147_v5  ;;  %v1537_v17 = vpop.f32.mrb[47].mxu1 }
 0x28d   :  { %v1883_v33 = vrot.slane %v1855_v58, 5  ;;  %v1975_v41 = vrot.slane %v1855_v58, 3  ;;  %v2138_v60 = vrot.slane %v1855_v58, 1  ;;  %v1621_v63 = vadd.f32 %v4157_v27, %v1542_v3 }
 0x28e   :  { %v3079_v0 = vpop.f32.mrb[48].mxu1 }
 0x28f   :  { %v1885_v26 = vsel %vm1884_vm5, %v1883_v33, %v1882_v25  ;;  %v1976_v30 = vsel %vm1884_vm5, %v1975_v41, %v1974_v42  ;;  %v1629_v31 = vmax.f32 %v1621_v63, 0.0  ;;  %v2139_v34 = vsel %vm1884_vm5, %v2138_v60, %v2137_v10  ;;  %v1546_v36 = vpop.f32.mrb[49].mxu1 }
 0x291   :  { %v1848_v37 = vadd.f32 %v1774_v22, %v1629_v31 }
 0x292   :  { %v3082_v38 = vpop.f32.mrb[50].mxu1 }
 0x293   :  { %v1856_v5 = vmax.f32 %v1848_v37, 0.0  ;;  %v1559_v44 = vadd.f32 %v3082_v38, %v4149_v32  ;;  %v1554_v45 = vpop.f32.mrb[51].mxu1 }
 0x294   :  { %v1862_v45 = vld [vmem:[#allocation5 + $0xa0] sm:$0xff] }
 0x295   :  { %v1886_v9 = vrot.slane %v1856_v5, 4  ;;  %v1977_v11 = vrot.slane %v1856_v5, 2  ;;  %v2140_v14 = vsel %vm1887_vm6, %v1856_v5, %v2139_v34  ;;  %v1622_v20 = vadd.f32 %v4157_v27, %v1559_v44 }
 0x296   :  { %v3085_v40 = vpop.f32.mrb[52].mxu1 }
 0x297   :  { %v1888_v46 = vsel %vm1887_vm6, %v1886_v9, %v1885_v26  ;;  %v1630_v51 = vmax.f32 %v1622_v20, 0.0  ;;  %v1563_v53 = vpop.f32.mrb[53].mxu1  ;;  %v1978_v55 = vsel %vm1887_vm6, %v1977_v11, %v1976_v30  ;;  %v1842_v30 = vadd.f32 %v4143_v50, %v4159_v28  ;;  %v1865_v20 = vld [vmem:[#allocation5 + $0xb8] sm:$0xff] }
 0x299   :  { %v1849_v56 = vadd.f32 %v1791_v29, %v1630_v51  ;;  %v1863_v29 = vld [vmem:[#allocation5 + $0xa8] sm:$0xff] }
 0x29a   :  { %v3088_v59 = vpop.f32.mrb[54].mxu1 }
 0x29b   :  { %v1857_v62 = vmax.f32 %v1849_v56, 0.0  ;;  %v1576_v16 = vadd.f32 %v3088_v59, %v4151_v54  ;;  %v1571_v32 = vpop.f32.mrb[55].mxu1  ;;  %v2232_v56 = vld [vmem:[#allocation5 + $0x118] sm:$0xff] }
 0x29d   :  { %v1889_v1 = vrot.slane %v1857_v62, 3  ;;  %v1979_v4 = vrot.slane %v1857_v62, 1  ;;  %v2141_v6 = vrot.slane %v1857_v62, 7  ;;  %v1623_v7 = vadd.f32 %v4157_v27, %v1576_v16 }
 0x29e   :  { %v3091_v2 = vpop.f32.mrb[56].mxu1 }
 0x29f   :  { %v1891_v13 = vsel %vm1890_vm7, %v1889_v1, %v1888_v46  ;;  %v2142_v15 = vsel %vm1890_vm7, %v2141_v6, %v2140_v14  ;;  %v1631_v18 = vmax.f32 %v1623_v7, 0.0  ;;  %v1980_v8 = vsel %vm1890_vm7, %v1979_v4, %v1978_v55  ;;  %v1580_v24 = vpop.f32.mrb[57].mxu1  ;;  %v1864_v14 = vld [vmem:[#allocation5 + $0xb0] sm:$0xff]  ;;  %v2224_v6 = vld [vmem:[#allocation5 + $0xe0] sm:$0xff]  ;;  %v2225_v7 = vld [vmem:[#allocation5 + $0xe8] sm:$0xff] }
 0x2a0   :  { %v2231_v55 = vld [vmem:[#allocation5 + $0x110] sm:$0xff] }
 0x2a1   :  { %v1850_v25 = vadd.f32 %v1808_v35, %v1631_v18  ;;  %v3302_v59 = vpack.c.bf16 %v2232_v56, %v2231_v55  ;;  %v2654_v35 = vld [vmem:[#allocation7 + $0x3] ss:$0 sm:$0xff]  ;;  %v2226_v18 = vld [vmem:[#allocation5 + $0xf0] sm:$0xff] }
 0x2a2   :  { %v3094_v42 = vpop.f32.mrb[58].mxu1 }
 0x2a3   :  { %v1858_v54 = vmax.f32 %v1850_v25, 0.0  ;;  %v1593_v48 = vadd.f32 %v3094_v42, %v4153_v21  ;;  %v1588_v49 = vpop.f32.mrb[59].mxu1 }
 0x2a5   :  { %v1892_v10 = vrot.slane %v1858_v54, 2  ;;  %v1981_v23 = vsel %vm1893_vm8, %v1858_v54, %v1980_v8  ;;  %v2143_v57 = vrot.slane %v1858_v54, 6  ;;  %v1624_v58 = vadd.f32 %v4157_v27, %v1593_v48  ;;  %v2227_v8 = vld [vmem:[#allocation5 + $0xf8] sm:$0xff] }
 0x2a6   :  { %v3097_v3 = vpop.f32.mrb[60].mxu1  ;;  %v3308_v25 = vpack.c.bf16 %v2227_v8, %v2226_v18 }
 0x2a7   :  { %v1632_v17 = vmax.f32 %v1624_v58, 0.0  ;;  %v1597_v22 = vpop.f32.mrb[61].mxu1  ;;  %v1894_v33 = vsel %vm1893_vm8, %v1892_v10, %v1891_v13  ;;  %v2144_v41 = vsel %vm1893_vm8, %v2143_v57, %v2142_v15  ;;  %v3305_v13 = vpack.c.bf16 %v2225_v7, %v2224_v6  ;;  %v2391_v57 = vld [vmem:[#allocation5 + $0x128] sm:$0xff]  ;;  %v2392_v3 = vld [vmem:[#allocation5 + $0x130] sm:$0xff] }
 0x2a9   :  { %v1851_v60 = vadd.f32 %v1825_v39, %v1632_v17  ;;  %v2393_v17 = vld [vmem:[#allocation5 + $0x138] sm:$0xff] }
 0x2aa   :  { %v3100_v63 = vpop.f32.mrb[62].mxu1  ;;  %v3314_v22 = vpack.c.bf16 %v2393_v17, %v2392_v3 }
 0x2ab   :  { %v1859_v0 = vmax.f32 %v1851_v60, 0.0  ;;  %v1610_v26 = vadd.f32 %v3100_v63, %v4155_v52  ;;  %v1605_v21 = vpop.f32.mrb[63].mxu1  ;;  %v3281_v52 = vpack.c.bf16 %v1863_v29, %v1862_v45  ;;  %v2659_v63 = vld [vmem:[#allocation7 + $0x4] ss:$0 sm:$0xff] }
 0x2ad   :  { %v1895_v19 = vrot.slane %v1859_v0, 1  ;;  %v1982_v31 = vrot.slane %v1859_v0, 7  ;;  %v2145_v34 = vrot.slane %v1859_v0, 5  ;;  %v1625_v36 = vadd.f32 %v4157_v27, %v1610_v26 }
 0x2ae   :  { %v3284_v27 = vpack.c.bf16 %v1865_v20, %v1864_v14 }
 0x2af   :  { %v1633_v37 = vmax.f32 %v1625_v36, 0.0  ;;  %v1897_v38 = vsel %vm1896_vm9, %v1895_v19, %v1894_v33  ;;  %v1983_v5 = vsel %vm1896_vm9, %v1982_v31, %v1981_v23  ;;  %v2146_v44 = vsel %vm1896_vm9, %v2145_v34, %v2144_v41  ;;  %v2390_v23 = vld [vmem:[#allocation5 + $0x120] sm:$0xff] }
 0x2b0   :  { %v3311_v58 = vpack.c.bf16 %v2391_v57, %v2390_v23  ;;  %v2660_v31 = vld [vmem:[#allocation7 + $0x5] ss:$0 sm:$0xff] }
 0x2b1   :  { %v1852_v9 = vadd.f32 %v1842_v30, %v1633_v37 }
 0x2b3   :  { %v1860_v11 = vmax.f32 %v1852_v9, 0.0 }
 0x2b5   :  { %v4193_v40 = vsel %vm1898_vm10, %v1860_v11, %v1897_v38  ;;  %v1984_v50 = vrot.slane %v1860_v11, 6  ;;  %v2147_v28 = vrot.slane %v1860_v11, 4 }
 0x2b6   :  { %3166 = vmatmul.mubr.msk.f32.vlgmr.msra.gmra.mrb[64].mxu1 %vm201_vm0, %v4193_v40 }
 0x2b7   :  { %3282 = vmatpush3.bf16.msra.mxu1 %v3281_v52  ;;  %3176 = vmatprep.mubr.msk.f32.mxu1 %vm3457_vm3, %v3458_v61  ;;  %v1985_v46 = vsel %vm1898_vm10, %v1984_v50, %v1983_v5  ;;  %v2148_v51 = vsel %vm1898_vm10, %v2147_v28, %v2146_v44 }
 0x2b8   :  { %3283 = vmatprep.subr.bf16.mxu1 %v3456_v43 }
 0x2bb   :  { %3285 = vmatpush3.bf16.msra.mxu1 %v3284_v27 }
 0x2bc   :  { %3286 = vmatprep.subr.bf16.mxu1 %v3456_v43 }
 0x2be   :  { %3177 = vmatmul.mubr.msk.f32.vlgmr.msra.gmra.mrb[66].mxu1 %vm201_vm0, %v1985_v46 }
 0x2bf   :  { %3288 = vmatpush3.bf16.msra.mxu1 %v4125_v47  ;;  %3187 = vmatprep.mubr.msk.f32.mxu1 %vm3457_vm3, %v3458_v61  ;;  %v2229_v47 = vld [vmem:[#allocation5 + $0x100] sm:$0xff] }
 0x2c0   :  { %3289 = vmatprep.subr.bf16.mxu1 %v3456_v43 }
 0x2c3   :  { %3291 = vmatpush3.bf16.msra.mxu1 %v4137_v12  ;;  %v2230_v12 = vld [vmem:[#allocation5 + $0x108] sm:$0xff] }
 0x2c4   :  { %3292 = vmatprep.subr.bf16.mxu1 %v3456_v43  ;;  %v3299_v53 = vpack.c.bf16 %v2230_v12, %v2229_v47 }
 0x2c6   :  { %3188 = vmatmul.mubr.msk.f32.vlgmr.msra.gmra.mrb[68].mxu1 %vm201_vm0, %v1985_v46 }
 0x2c7   :  { %3294 = vmatpush3.bf16.msra.mxu1 %v3281_v52  ;;  %3198 = vmatprep.mubr.msk.f32.mxu1 %vm3457_vm3, %v3458_v61 }
 0x2c8   :  { %3295 = vmatprep.subr.bf16.mxu1 %v3456_v43 }
 0x2cb   :  { %3297 = vmatpush3.bf16.msra.mxu1 %v3284_v27 }
 0x2cc   :  { %3298 = vmatprep.subr.bf16.mxu1 %v3456_v43 }
 0x2ce   :  { %3199 = vmatmul.mubr.msk.f32.vlgmr.msra.gmra.mrb[70].mxu1 %vm201_vm0, %v2148_v51 }
 0x2cf   :  { %3209 = vmatprep.mubr.msk.f32.mxu1 %vm3457_vm3, %v3458_v61  ;;  %3300 = vmatpush3.bf16.msra.mxu1 %v3299_v53 }
 0x2d0   :  { %3301 = vmatprep.subr.bf16.mxu1 %v3456_v43 }
 0x2d3   :  { %3303 = vmatpush3.bf16.msra.mxu1 %v3302_v59 }
 0x2d4   :  { %3304 = vmatprep.subr.bf16.mxu1 %v3456_v43 }
 0x389   :  { %v1968_v62 = vpop.f32.mrb[64].mxu1 }
 0x38a   :  { %v3167_v16 = vpop.f32.mrb[65].mxu1 }
 0x391   :  { %v2054_v32 = vpop.f32.mrb[66].mxu1 }
 0x392   :  { %v2055_v1 = vadd.f32 %v2054_v32, %v1968_v62  ;;  %v3178_v4 = vpop.f32.mrb[67].mxu1 }
 0x394   :  { %v2063_v2 = vadd.f32 %v2654_v35, %v2055_v1 }
 0x396   :  { %v2064_v15 = vmax.f32 %v2063_v2, 0.0 }
 0x398   :  { %3210 = vmatmul.mubr.msk.f32.vlgmr.msra.gmra.mrb[72].mxu1 %vm201_vm0, %v2064_v15 }
 0x399   :  { %v2131_v24 = vpop.f32.mrb[68].mxu1  ;;  %3306 = vmatpush3.bf16.msra.mxu1 %v3305_v13  ;;  %3220 = vmatprep.mubr.msk.f32.mxu1 %vm3457_vm3, %v3458_v61 }
 0x39a   :  { %v3189_v42 = vpop.f32.mrb[69].mxu1  ;;  %3307 = vmatprep.subr.bf16.mxu1 %v3456_v43 }
 0x39d   :  { %3309 = vmatpush3.bf16.msra.mxu1 %v3308_v25 }
 0x39e   :  { %3310 = vmatprep.subr.bf16.mxu1 %v3456_v43 }
 0x3a1   :  { %v2217_v54 = vpop.f32.mrb[70].mxu1 }
 0x3a2   :  { %v2218_v48 = vadd.f32 %v2217_v54, %v2131_v24  ;;  %v3200_v49 = vpop.f32.mrb[71].mxu1 }
 0x3a4   :  { %v2221_v39 = vadd.f32 %v2654_v35, %v2218_v48 }
 0x3a6   :  { %v2222_v10 = vmax.f32 %v2221_v39, 0.0 }
 0x3a8   :  { %3221 = vmatmul.mubr.msk.f32.vlgmr.msra.gmra.mrb[74].mxu1 %vm201_vm0, %v2222_v10 }
 0x3a9   :  { %3231 = vmatprep.mubr.msk.f32.mxu1 %vm3457_vm3, %v3458_v61  ;;  %3312 = vmatpush3.bf16.msra.mxu1 %v3311_v58 }
 0x3aa   :  { %3313 = vmatprep.subr.bf16.mxu1 %v3456_v43 }
 0x3ad   :  { %3315 = vmatpush3.bf16.msra.mxu1 %v3314_v22 }
 0x46b   :  { %v2302_v33 = vpop.f32.mrb[72].mxu1 }
 0x46c   :  { %v3211_v41 = vpop.f32.mrb[73].mxu1 }
 0x47b   :  { %v2375_v60 = vpop.f32.mrb[74].mxu1 }
 0x47c   :  { %v2376_v0 = vadd.f32 %v2375_v60, %v2302_v33  ;;  %v3222_v26 = vpop.f32.mrb[75].mxu1 }
 0x47e   :  { %v2384_v21 = vadd.f32 %v2659_v63, %v2376_v0 }
 0x480   :  { %v2385_v30 = vmax.f32 %v2384_v21, 0.0 }
 0x482   :  { %v2387_v61 = vadd.f32 %v2385_v30, %v4193_v40 }
 0x484   :  { %v2388_v19 = vmax.f32 %v2387_v61, 0.0 }
 0x486   :  { %3232 = vmatmul.mubr.msk.f32.vlgmr.msra.gmra.mrb[76].mxu1 %vm201_vm0, %v2388_v19 }
 0x559   :  { %v2468_v43 = vpop.f32.mrb[76].mxu1 }
 0x55a   :  { %v2469_v34 = vadd.f32 %v2660_v31, %v2468_v43  ;;  %v3233_v36 = vpop.f32.mrb[77].mxu1 }
 0x55c   :  { %2472 = vst.msk [vmem:[#allocation8] sm:$0xff] %vm201_vm0, %v2469_v34 }
 0x55d   :  { %3434 = shalt.err (!%p3431_p0)
}
 0x55e   :  { %s3435_s25 = scalar_lea.hbm %s4245_s3, 128 }
 0x55f   :  { %p3436_p1 = scmp.ne.s32.totalorder %s4245_s3, %s3435_s25  ;;  %p3439_p2 = scmp.lt.u32.totalorder %s3435_s25, %s4245_s3 }
 0x561   :  { %p3441_p3 = pnand %p3439_p2, %p3436_p1 }
 0x563   :  { %3444 = shalt.err (!%p3441_p3)
}
 0x564   :  { %2482 = dma.vmem_to_hbm [thread:$0]  %s2480_s21, 128, %s4245_s3, [#allocation4]  }
 0x565   :  { %3449 = dma.done.wait [#allocation4], 128  }
 0x566   :  { %3450 = vsyncadd [#allocation4], 4294967168 }
 0x567   :  { %2486 = vsyncpa [#allocation3], 1 }
 0x568   :  { %2487 = vsyncpa [#allocation6], 1 }
 0x569   :  { %2488 = vsyncpa [#allocation4], 1 }

</bundles_post_ra>
